<compile_context>
chip_gen: v6e
topology: v6e:2x2x1
jax: 0.10.0
libtpu: 0.0.40
codegen_flags: <defaults>
</compile_context>

<pallas_src>
import jax
import jax.numpy as jnp
from jax import lax
from jax.experimental import pallas as pl
from jax.experimental.pallas import tpu as pltpu


def _round_up(x, m):
    return (x + m - 1) // m * m


def residual_block(x_nchw, w1, g1, b1, m1, v1, w2, g2, b2, m2, v2,
                   eps=1e-5, compute_dtype=jnp.float32, images_per_step=None):
    """x_nchw: (N, C, H, W) f32.  w*: (K, K, C, C) HWIO.  BN params: (C,).

    compute_dtype selects the MXU operand dtype (f32 accumulation either way):
    use float32 on v5e, bfloat16 is the fast path on v6e/v7x.
    """
    x = x_nchw.astype(jnp.float32)
    N, C, H, W = x.shape
    K = int(w1.shape[0])
    p = K // 2
    Hp, Wp = H + 2 * p, W + 2 * p
    L = Hp * Wp                                  # flat padded plane length
    Lp = _round_up(L, 128)                       # lane-aligned plane length
    M = _round_up(p * Wp + p, 128)               # lane-aligned halo margin

    sub = 16 if compute_dtype == jnp.bfloat16 else 8
    Cp = _round_up(C, sub)                       # sublane-aligned channels
    KKCp = K * K * Cp

    # -------- images per grid step (keep >= 2 grid steps for v7x's 2 TCs) ---
    if images_per_step is None:
        nb = max(1, 4096 // Lp)                  # >= a few thousand lanes/step
        if N > 1:
            nb = min(nb, max(1, N // 2))
        nb = min(nb, N)
    else:
        nb = int(images_per_step)
    Npad = _round_up(N, nb)
    G = Npad // nb                               # grid length
    NbL = nb * Lp                                # packed lane axis per step
    Lext = NbL + 2 * M

    # -------- fold BN (inference): scale into conv weights, keep shift ------
    s1 = g1 / jnp.sqrt(v1 + eps)
    s2 = g2 / jnp.sqrt(v2 + eps)
    t1 = jnp.pad(b1 - m1 * s1, (0, Cp - C)).reshape(Cp, 1).astype(jnp.float32)
    t2 = jnp.pad(b2 - m2 * s2, (0, Cp - C)).reshape(Cp, 1).astype(jnp.float32)

    def fold(w, s):
        wf = w * s[None, None, None, :]                       # scale C_out
        wf = jnp.pad(wf, ((0, 0), (0, 0), (0, Cp - C), (0, Cp - C)))
        # HWIO -> (C_out, K*K*C_in); row-block order matches tap order below.
        return wf.transpose(3, 0, 1, 2).reshape(Cp, KKCp).astype(compute_dtype)

    A1 = fold(w1, s1)
    A2 = fold(w2, s2)

    # -------- input: pad N/C/spatial, flatten plane, lane-pad, pack nb ------
    xp = jnp.pad(x, ((0, Npad - N), (0, Cp - C), (p, p), (p, p)))  # zero halo
    xf = jnp.pad(xp.reshape(Npad, Cp, L), ((0, 0), (0, 0), (0, Lp - L)))
    xb = xf.reshape(G, nb, Cp, Lp).transpose(0, 2, 1, 3).reshape(G, Cp, NbL)
    xext = jnp.pad(xb, ((0, 0), (0, 0), (M, M)))      # (G, Cp, Lext), f32

    # interior mask in the packed lane frame (identical for every grid block)
    lane = jnp.arange(NbL, dtype=jnp.int32) % Lp
    hp_i, wp_i = lane // Wp, lane % Wp
    interior = ((lane < L) & (hp_i >= p) & (hp_i < p + H)
                & (wp_i >= p) & (wp_i < p + W))
    mask = interior.astype(jnp.float32).reshape(1, NbL)

    # static flat shifts for the K*K taps (ky-major, kx-minor)
    shifts = tuple((ky - p) * Wp + (kx - p)
                   for ky in range(K) for kx in range(K))

    mm_prec = lax.Precision.HIGHEST if compute_dtype == jnp.float32 else None

    def kernel(x_ref, a1_ref, t1_ref, a2_ref, t2_ref, m_ref, out_ref, ybuf_ref):
        # zero the ybuf halo margins once; the interior is rewritten each step
        @pl.when(pl.program_id(0) == 0)
        def _():
            ybuf_ref[:, pl.ds(0, M)] = jnp.zeros((Cp, M), ybuf_ref.dtype)
            ybuf_ref[:, pl.ds(M + NbL, M)] = jnp.zeros((Cp, M), ybuf_ref.dtype)

        msk = m_ref[...]                                      # (1, NbL) f32

        # conv1: transposed im2col -> ONE MXU matmul, lane-dense output.
        # x_ref stays f32 (skip connection precision); cast only the RHS.
        b1m = jnp.concatenate(
            [x_ref[:, pl.ds(M + s, NbL)] for s in shifts], axis=0)
        y1 = jnp.dot(a1_ref[...], b1m.astype(compute_dtype),
                     preferred_element_type=jnp.float32, precision=mm_prec)
        y1 = jnp.maximum(y1 + t1_ref[...], 0.0) * msk     # BN shift+ReLU+halo0
        ybuf_ref[:, pl.ds(M, NbL)] = y1.astype(ybuf_ref.dtype)

        # conv2 (Identity activation)
        b2m = jnp.concatenate(
            [ybuf_ref[:, pl.ds(M + s, NbL)] for s in shifts], axis=0)
        y2 = jnp.dot(a2_ref[...], b2m,
                     preferred_element_type=jnp.float32, precision=mm_prec)
        y2 = y2 + t2_ref[...]

        # residual add (f32 centre tap, lane-aligned slice) + final ReLU
        out_ref[...] = jnp.maximum(x_ref[:, pl.ds(M, NbL)] + y2, 0.0)

    out_blk = pl.pallas_call(
        kernel,
        out_shape=jax.ShapeDtypeStruct((G, Cp, NbL), jnp.float32),
        grid=(G,),
        in_specs=[
            pl.BlockSpec((None, Cp, Lext), lambda g: (g, 0, 0)),  # x (f32)
            pl.BlockSpec((Cp, KKCp), lambda g: (0, 0)),           # A1
            pl.BlockSpec((Cp, 1), lambda g: (0, 0)),              # t1
            pl.BlockSpec((Cp, KKCp), lambda g: (0, 0)),           # A2
            pl.BlockSpec((Cp, 1), lambda g: (0, 0)),              # t2
            pl.BlockSpec((1, NbL), lambda g: (0, 0)),             # interior mask
        ],
        out_specs=pl.BlockSpec((None, Cp, NbL), lambda g: (g, 0, 0)),
        scratch_shapes=[pltpu.VMEM((Cp, Lext), compute_dtype)],   # y1 staging
        compiler_params=pltpu.CompilerParams(
            dimension_semantics=("parallel",),
            vmem_limit_bytes=32 * 1024 * 1024),
    )(xext, A1, t1, A2, t2, mask)

    # unpack lane axis -> images, drop channel/batch padding, crop spatial halo
    out = out_blk.reshape(G, Cp, nb, Lp).transpose(0, 2, 1, 3)
    out = out.reshape(Npad, Cp, Lp)[:N, :C, :L]
    return out.reshape(N, C, Hp, Wp)[:, :, p:p + H, p:p + W]


def _reference(x_nchw, w1, g1, b1, m1, v1, w2, g2, b2, m2, v2, eps=1e-5):
    """Pure-JAX reference (HIGHEST-precision lax.conv), PyTorch eval-mode."""
    x = jnp.transpose(x_nchw, (0, 2, 3, 1))
    dn = ('NHWC', 'HWIO', 'NHWC')
    prec = lax.Precision.HIGHEST

    def bn(y, g, b, m, v):
        return (y - m) / jnp.sqrt(v + eps) * g + b

    y = lax.conv_general_dilated(x, w1, (1, 1), 'SAME',
                                 dimension_numbers=dn, precision=prec)
    y = jnp.maximum(bn(y, g1, b1, m1, v1), 0.0)
    y = lax.conv_general_dilated(y, w2, (1, 1), 'SAME',
                                 dimension_numbers=dn, precision=prec)
    y = bn(y, g2, b2, m2, v2)
    out = jnp.maximum(x + y, 0.0)
    return jnp.transpose(out, (0, 3, 1, 2))


if __name__ == "__main__":
    # Small shapes consistent with ResidualBlock(channels=4, kernel_size=3).
    N, C, H, W, K = 2, 4, 16, 16, 3

    key = jax.random.PRNGKey(0)
    (kx, kw1, kw2, kg1, kb1, km1, kv1, kg2, kb2, km2, kv2) = \
        jax.random.split(key, 11)

    x = jax.random.normal(kx, (N, C, H, W), jnp.float32)

    # Conv weights (HWIO); bias=False in the module.
    w1 = 0.1 * jax.random.normal(kw1, (K, K, C, C), jnp.float32)
    w2 = 0.1 * jax.random.normal(kw2, (K, K, C, C), jnp.float32)

    # BatchNorm parameters (non-trivial stats so the BN fold is exercised).
    g1 = 1.0 + 0.1 * jax.random.normal(kg1, (C,), jnp.float32)
    b1 = 0.1 * jax.random.normal(kb1, (C,), jnp.float32)
    m1 = 0.1 * jax.random.normal(km1, (C,), jnp.float32)
    v1 = 1.0 + 0.2 * jax.random.uniform(kv1, (C,), jnp.float32)
    g2 = 1.0 + 0.1 * jax.random.normal(kg2, (C,), jnp.float32)
    b2 = 0.1 * jax.random.normal(kb2, (C,), jnp.float32)
    m2 = 0.1 * jax.random.normal(km2, (C,), jnp.float32)
    v2 = 1.0 + 0.2 * jax.random.uniform(kv2, (C,), jnp.float32)

    ref = _reference(x, w1, g1, b1, m1, v1, w2, g2, b2, m2, v2)

    # f32 MXU operands (default; the right choice on v5e) -- tight check.
    out_f32 = jax.block_until_ready(
        residual_block(x, w1, g1, b1, m1, v1, w2, g2, b2, m2, v2,
                       compute_dtype=jnp.float32))
    assert out_f32.shape == (N, C, H, W)
    assert jnp.allclose(out_f32, ref, atol=1e-4, rtol=1e-4), "f32 mismatch"

    # bf16 MXU operands (fast path on v6e/v7x); residual stays f32 in-kernel.
    out_bf16 = jax.block_until_ready(
        residual_block(x, w1, g1, b1, m1, v1, w2, g2, b2, m2, v2,
                       compute_dtype=jnp.bfloat16))
    assert out_bf16.shape == (N, C, H, W)
    assert jnp.allclose(out_bf16, ref, atol=5e-2, rtol=5e-2), "bf16 mismatch"

    print("KERNEL_OK")
</pallas_src>

<mosaic_0001>
module attributes {stable_mosaic.version = 11 : i64} {
  func.func @kernel(%arg0: i32, %arg1: memref<1x8x640xf32, #tpu.memory_space<vmem>>, %arg2: memref<8x72xf32, #tpu.memory_space<vmem>>, %arg3: memref<8x1xf32, #tpu.memory_space<vmem>>, %arg4: memref<8x72xf32, #tpu.memory_space<vmem>>, %arg5: memref<8x1xf32, #tpu.memory_space<vmem>>, %arg6: memref<1x384xf32, #tpu.memory_space<vmem>>, %arg7: memref<1x8x384xf32, #tpu.memory_space<vmem>>, %arg8: memref<8x640xf32, #tpu.memory_space<vmem>>) attributes {dimension_semantics = [#tpu.dimension_semantics<parallel>], iteration_bounds = array<i64: 2>, scalar_prefetch = 0 : i64, scratch_operands = 1 : i64, tpu.core_type = #tpu.core_type<tc>, window_params = [{transform_indices = @transform_0, window_bounds = array<i64: 1, 8, 640>}, {pipeline_mode = #tpu.pipeline_mode<synchronous>, transform_indices = @transform_1, window_bounds = array<i64: 8, 72>}, {pipeline_mode = #tpu.pipeline_mode<synchronous>, transform_indices = @transform_2, window_bounds = array<i64: 8, 1>}, {pipeline_mode = #tpu.pipeline_mode<synchronous>, transform_indices = @transform_3, window_bounds = array<i64: 8, 72>}, {pipeline_mode = #tpu.pipeline_mode<synchronous>, transform_indices = @transform_4, window_bounds = array<i64: 8, 1>}, {pipeline_mode = #tpu.pipeline_mode<synchronous>, transform_indices = @transform_5, window_bounds = array<i64: 1, 384>}, {transform_indices = @transform_6, window_bounds = array<i64: 1, 8, 384>}]} {
    %c0_i32 = arith.constant 0 : i32
    %0 = arith.cmpi eq, %arg0, %c0_i32 : i32
    %1 = arith.extui %0 : i1 to i32
    %c0_i32_0 = arith.constant 0 : i32
    %2 = arith.cmpi ne, %1, %c0_i32_0 : i32
    scf.if %2 {
      %cst_57 = arith.constant 0.000000e+00 : f32
      %56 = vector.broadcast %cst_57 : f32 to vector<8x128xf32>
      %c0_58 = arith.constant 0 : index
      %c0_59 = arith.constant 0 : index
      %57 = vector.load %arg8[%c0_58, %c0_59] : memref<8x640xf32, #tpu.memory_space<vmem>>, vector<8x128xf32>
      tpu.vector_store %arg8[%c0_58, %c0_59], %56 {strides = array<i32>} : memref<8x640xf32, #tpu.memory_space<vmem>>, vector<8x128xf32>,
      %cst_60 = arith.constant 0.000000e+00 : f32
      %58 = vector.broadcast %cst_60 : f32 to vector<8x128xf32>
      %c0_61 = arith.constant 0 : index
      %c512 = arith.constant 512 : index
      %59 = vector.load %arg8[%c0_61, %c512] : memref<8x640xf32, #tpu.memory_space<vmem>>, vector<8x128xf32>
      tpu.vector_store %arg8[%c0_61, %c512], %58 {strides = array<i32>} : memref<8x640xf32, #tpu.memory_space<vmem>>, vector<8x128xf32>,
    } else {
    }
    %c0 = arith.constant 0 : index
    %c0_1 = arith.constant 0 : index
    %3 = vector.load %arg6[%c0, %c0_1] : memref<1x384xf32, #tpu.memory_space<vmem>>, vector<1x384xf32>
    %c0_2 = arith.constant 0 : index
    %c0_3 = arith.constant 0 : index
    %c109 = arith.constant 109 : index
    %4 = vector.load %arg1[%c0_2, %c0_3, %c109] : memref<1x8x640xf32, #tpu.memory_space<vmem>>, vector<1x8x384xf32>
    %5 = vector.shape_cast %4 : vector<1x8x384xf32> to vector<8x384xf32>
    %c0_4 = arith.constant 0 : index
    %c0_5 = arith.constant 0 : index
    %c110 = arith.constant 110 : index
    %6 = vector.load %arg1[%c0_4, %c0_5, %c110] : memref<1x8x640xf32, #tpu.memory_space<vmem>>, vector<1x8x384xf32>
    %7 = vector.shape_cast %6 : vector<1x8x384xf32> to vector<8x384xf32>
    %c0_6 = arith.constant 0 : index
    %c0_7 = arith.constant 0 : index
    %c111 = arith.constant 111 : index
    %8 = vector.load %arg1[%c0_6, %c0_7, %c111] : memref<1x8x640xf32, #tpu.memory_space<vmem>>, vector<1x8x384xf32>
    %9 = vector.shape_cast %8 : vector<1x8x384xf32> to vector<8x384xf32>
    %c0_8 = arith.constant 0 : index
    %c0_9 = arith.constant 0 : index
    %c127 = arith.constant 127 : index
    %10 = vector.load %arg1[%c0_8, %c0_9, %c127] : memref<1x8x640xf32, #tpu.memory_space<vmem>>, vector<1x8x384xf32>
    %11 = vector.shape_cast %10 : vector<1x8x384xf32> to vector<8x384xf32>
    %c0_10 = arith.constant 0 : index
    %c0_11 = arith.constant 0 : index
    %c128 = arith.constant 128 : index
    %12 = vector.load %arg1[%c0_10, %c0_11, %c128] : memref<1x8x640xf32, #tpu.memory_space<vmem>>, vector<1x8x384xf32>
    %13 = vector.shape_cast %12 : vector<1x8x384xf32> to vector<8x384xf32>
    %c0_12 = arith.constant 0 : index
    %c0_13 = arith.constant 0 : index
    %c129 = arith.constant 129 : index
    %14 = vector.load %arg1[%c0_12, %c0_13, %c129] : memref<1x8x640xf32, #tpu.memory_space<vmem>>, vector<1x8x384xf32>
    %15 = vector.shape_cast %14 : vector<1x8x384xf32> to vector<8x384xf32>
    %c0_14 = arith.constant 0 : index
    %c0_15 = arith.constant 0 : index
    %c145 = arith.constant 145 : index
    %16 = vector.load %arg1[%c0_14, %c0_15, %c145] : memref<1x8x640xf32, #tpu.memory_space<vmem>>, vector<1x8x384xf32>
    %17 = vector.shape_cast %16 : vector<1x8x384xf32> to vector<8x384xf32>
    %c0_16 = arith.constant 0 : index
    %c0_17 = arith.constant 0 : index
    %c146 = arith.constant 146 : index
    %18 = vector.load %arg1[%c0_16, %c0_17, %c146] : memref<1x8x640xf32, #tpu.memory_space<vmem>>, vector<1x8x384xf32>
    %19 = vector.shape_cast %18 : vector<1x8x384xf32> to vector<8x384xf32>
    %c0_18 = arith.constant 0 : index
    %c0_19 = arith.constant 0 : index
    %c147 = arith.constant 147 : index
    %20 = vector.load %arg1[%c0_18, %c0_19, %c147] : memref<1x8x640xf32, #tpu.memory_space<vmem>>, vector<1x8x384xf32>
    %21 = vector.shape_cast %20 : vector<1x8x384xf32> to vector<8x384xf32>
    %22 = tpu.concatenate %5, %7, %9, %11, %13, %15, %17, %19, %21 in 0 : vector<8x384xf32>, vector<8x384xf32>, vector<8x384xf32>, vector<8x384xf32>, vector<8x384xf32>, vector<8x384xf32>, vector<8x384xf32>, vector<8x384xf32>, vector<8x384xf32> -> vector<72x384xf32>
    %c0_20 = arith.constant 0 : index
    %c0_21 = arith.constant 0 : index
    %23 = vector.load %arg2[%c0_20, %c0_21] : memref<8x72xf32, #tpu.memory_space<vmem>>, vector<8x72xf32>
    %cst = arith.constant dense<0.000000e+00> : vector<8x384xf32>
    %24 = tpu.matmul %23, %22, %cst {dimension_numbers = #tpu.dot_dimension_numbers<[1], [0], [0], [1], [0, 0, 1, 1], [], []>, precision = #tpu.contract_precision<fp32>} : vector<8x72xf32>, vector<72x384xf32>, vector<8x384xf32> -> vector<8x384xf32>
    %c0_22 = arith.constant 0 : index
    %c0_23 = arith.constant 0 : index
    %25 = vector.load %arg3[%c0_22, %c0_23] : memref<8x1xf32, #tpu.memory_space<vmem>>, vector<8x1xf32>
    %26 = vector.broadcast %25 : vector<8x1xf32> to vector<8x384xf32>
    %27 = arith.addf %24, %26 : vector<8x384xf32>
    %cst_24 = arith.constant 0.000000e+00 : f32
    %28 = vector.broadcast %cst_24 : f32 to vector<8x384xf32>
    %29 = arith.maximumf %27, %28 : vector<8x384xf32>
    %30 = vector.broadcast %3 : vector<1x384xf32> to vector<8x384xf32>
    %31 = arith.mulf %29, %30 : vector<8x384xf32>
    %c0_25 = arith.constant 0 : index
    %c128_26 = arith.constant 128 : index
    %32 = vector.load %arg8[%c0_25, %c128_26] : memref<8x640xf32, #tpu.memory_space<vmem>>, vector<8x384xf32>
    tpu.vector_store %arg8[%c0_25, %c128_26], %31 {strides = array<i32>} : memref<8x640xf32, #tpu.memory_space<vmem>>, vector<8x384xf32>,
    %c0_27 = arith.constant 0 : index
    %c109_28 = arith.constant 109 : index
    %33 = vector.load %arg8[%c0_27, %c109_28] : memref<8x640xf32, #tpu.memory_space<vmem>>, vector<8x384xf32>
    %c0_29 = arith.constant 0 : index
    %c110_30 = arith.constant 110 : index
    %34 = vector.load %arg8[%c0_29, %c110_30] : memref<8x640xf32, #tpu.memory_space<vmem>>, vector<8x384xf32>
    %c0_31 = arith.constant 0 : index
    %c111_32 = arith.constant 111 : index
    %35 = vector.load %arg8[%c0_31, %c111_32] : memref<8x640xf32, #tpu.memory_space<vmem>>, vector<8x384xf32>
    %c0_33 = arith.constant 0 : index
    %c127_34 = arith.constant 127 : index
    %36 = vector.load %arg8[%c0_33, %c127_34] : memref<8x640xf32, #tpu.memory_space<vmem>>, vector<8x384xf32>
    %c0_35 = arith.constant 0 : index
    %c128_36 = arith.constant 128 : index
    %37 = vector.load %arg8[%c0_35, %c128_36] : memref<8x640xf32, #tpu.memory_space<vmem>>, vector<8x384xf32>
    %c0_37 = arith.constant 0 : index
    %c129_38 = arith.constant 129 : index
    %38 = vector.load %arg8[%c0_37, %c129_38] : memref<8x640xf32, #tpu.memory_space<vmem>>, vector<8x384xf32>
    %c0_39 = arith.constant 0 : index
    %c145_40 = arith.constant 145 : index
    %39 = vector.load %arg8[%c0_39, %c145_40] : memref<8x640xf32, #tpu.memory_space<vmem>>, vector<8x384xf32>
    %c0_41 = arith.constant 0 : index
    %c146_42 = arith.constant 146 : index
    %40 = vector.load %arg8[%c0_41, %c146_42] : memref<8x640xf32, #tpu.memory_space<vmem>>, vector<8x384xf32>
    %c0_43 = arith.constant 0 : index
    %c147_44 = arith.constant 147 : index
    %41 = vector.load %arg8[%c0_43, %c147_44] : memref<8x640xf32, #tpu.memory_space<vmem>>, vector<8x384xf32>
    %42 = tpu.concatenate %33, %34, %35, %36, %37, %38, %39, %40, %41 in 0 : vector<8x384xf32>, vector<8x384xf32>, vector<8x384xf32>, vector<8x384xf32>, vector<8x384xf32>, vector<8x384xf32>, vector<8x384xf32>, vector<8x384xf32>, vector<8x384xf32> -> vector<72x384xf32>
    %c0_45 = arith.constant 0 : index
    %c0_46 = arith.constant 0 : index
    %43 = vector.load %arg4[%c0_45, %c0_46] : memref<8x72xf32, #tpu.memory_space<vmem>>, vector<8x72xf32>
    %cst_47 = arith.constant dense<0.000000e+00> : vector<8x384xf32>
    %44 = tpu.matmul %43, %42, %cst_47 {dimension_numbers = #tpu.dot_dimension_numbers<[1], [0], [0], [1], [0, 0, 1, 1], [], []>, precision = #tpu.contract_precision<fp32>} : vector<8x72xf32>, vector<72x384xf32>, vector<8x384xf32> -> vector<8x384xf32>
    %c0_48 = arith.constant 0 : index
    %c0_49 = arith.constant 0 : index
    %45 = vector.load %arg5[%c0_48, %c0_49] : memref<8x1xf32, #tpu.memory_space<vmem>>, vector<8x1xf32>
    %46 = vector.broadcast %45 : vector<8x1xf32> to vector<8x384xf32>
    %47 = arith.addf %44, %46 : vector<8x384xf32>
    %c0_50 = arith.constant 0 : index
    %c0_51 = arith.constant 0 : index
    %c128_52 = arith.constant 128 : index
    %48 = vector.load %arg1[%c0_50, %c0_51, %c128_52] : memref<1x8x640xf32, #tpu.memory_space<vmem>>, vector<1x8x384xf32>
    %49 = vector.shape_cast %48 : vector<1x8x384xf32> to vector<8x384xf32>
    %50 = arith.addf %49, %47 : vector<8x384xf32>
    %cst_53 = arith.constant 0.000000e+00 : f32
    %51 = vector.broadcast %cst_53 : f32 to vector<8x384xf32>
    %52 = arith.maximumf %50, %51 : vector<8x384xf32>
    %c0_54 = arith.constant 0 : index
    %c0_55 = arith.constant 0 : index
    %c0_56 = arith.constant 0 : index
    %53 = vector.load %arg7[%c0_54, %c0_55, %c0_56] : memref<1x8x384xf32, #tpu.memory_space<vmem>>, vector<1x8x384xf32>
    %54 = vector.shape_cast %53 : vector<1x8x384xf32> to vector<8x384xf32>
    %55 = vector.shape_cast %52 : vector<8x384xf32> to vector<1x8x384xf32>
    tpu.vector_store %arg7[%c0_54, %c0_55, %c0_56], %55 {strides = array<i32>} : memref<1x8x384xf32, #tpu.memory_space<vmem>>, vector<1x8x384xf32>,
    return
  }
  func.func @transform_0(%arg0: i32) -> (i32, i32, i32) {
    %c0_i32 = arith.constant 0 : i32
    %c0_i32_0 = arith.constant 0 : i32
    %c0_i32_1 = arith.constant 0 : i32
    return %arg0, %c0_i32, %c0_i32_0 : i32, i32, i32
  }
  func.func @transform_1(%arg0: i32) -> (i32, i32) {
    %c0_i32 = arith.constant 0 : i32
    %c0_i32_0 = arith.constant 0 : i32
    %c0_i32_1 = arith.constant 0 : i32
    return %c0_i32, %c0_i32_0 : i32, i32
  }
  func.func @transform_2(%arg0: i32) -> (i32, i32) {
    %c0_i32 = arith.constant 0 : i32
    %c0_i32_0 = arith.constant 0 : i32
    %c0_i32_1 = arith.constant 0 : i32
    return %c0_i32, %c0_i32_0 : i32, i32
  }
  func.func @transform_3(%arg0: i32) -> (i32, i32) {
    %c0_i32 = arith.constant 0 : i32
    %c0_i32_0 = arith.constant 0 : i32
    %c0_i32_1 = arith.constant 0 : i32
    return %c0_i32, %c0_i32_0 : i32, i32
  }
  func.func @transform_4(%arg0: i32) -> (i32, i32) {
    %c0_i32 = arith.constant 0 : i32
    %c0_i32_0 = arith.constant 0 : i32
    %c0_i32_1 = arith.constant 0 : i32
    return %c0_i32, %c0_i32_0 : i32, i32
  }
  func.func @transform_5(%arg0: i32) -> (i32, i32) {
    %c0_i32 = arith.constant 0 : i32
    %c0_i32_0 = arith.constant 0 : i32
    %c0_i32_1 = arith.constant 0 : i32
    return %c0_i32, %c0_i32_0 : i32, i32
  }
  func.func @transform_6(%arg0: i32) -> (i32, i32, i32) {
    %c0_i32 = arith.constant 0 : i32
    %c0_i32_0 = arith.constant 0 : i32
    %c0_i32_1 = arith.constant 0 : i32
    return %arg0, %c0_i32, %c0_i32_0 : i32, i32, i32
  }
}

</mosaic_0001>

<bundles_post_ra>
// kernel: tpu_custom_call.1
= control target key start
LH: loop header
LB: loop body
LE: loop exit
PB: predicated region body
PF: predicated region fallthrough
CT: control target
= control target key end

     0   :  { %11 = vsyncpa [#allocation4], 0  ;;  %s5499_s0 = inlined_call_operand.hbm [shape: f32[2,8,640], index: 0, kind: input, shape index: {}]   ;;  %s5500_s1 = inlined_call_operand.vmem [shape: f32[8,72], index: 1, kind: input, shape index: {}]   ;;  %s5501_s2 = inlined_call_operand.vmem [shape: f32[8,1], index: 2, kind: input, shape index: {}]   ;;  %s5502_s3 = inlined_call_operand.vmem [shape: f32[8,72], index: 3, kind: input, shape index: {}]   ;;  %s5503_s4 = inlined_call_operand.vmem [shape: f32[8,1], index: 4, kind: input, shape index: {}]   ;;  %s5504_s5 = inlined_call_operand.vmem [shape: f32[1,384], index: 5, kind: input, shape index: {}]   ;;  %s5505_s6 = inlined_call_operand.hbm [shape: f32[2,8,384], index: 6, kind: output, shape index: {}]  }
   0x1   :  { %13 = vsyncpa [#allocation4 + $0x1], 0 }
   0x2   :  { %14 = vsyncpa [#allocation5], 0 }
   0x3   :  { %16 = vsyncpa [#allocation5 + $0x1], 0  ;;  %s3918_s21 = smov 0   ;;  %s3920_s22 = smov 0  }
   0x4   :  { %s3922_s23 = smov 0   ;;  %s3924_s24 = smov 0  }
   0x5 LB: > { %s3939_s25 = sadd.s32 4294967295, %s3866_s24   ;;  %s3327_s26 = sadd.s32 4294967294, %s3866_s24   ;;  %s3866_s24 = sphi %s3924_s24, %s5576_s24   ;;  %s3862_s23 = sphi %s3922_s23, %s5575_s23   ;;  %s3858_s22 = sphi %s3920_s22, %s5574_s22   ;;  %s3854_s21 = sphi %s3918_s21, %s5573_s21  }
   0x6   : > { %s3943_s27 = sadd.s32 1, %s3866_s24   ;;  %s29_s28 = sadd.s32 1, %s3862_s23 }
   0x7   : > { %s26_s29 = ssub.s32 %s3866_s24, %s3943_s27  ;;  %p36_p0 = scmp.ne.s32.totalorder %s3862_s23, %s3858_s22 }
   0x8   : > { %p27_p1 = scmp.eq.s32.totalorder %s26_s29, 0  ;;  %p37_p2 = scmp.eq.s32.totalorder %s3866_s24, 0 }
   0x9   : > { %p42_p3 = scmp.ne.s32.totalorder %s3858_s22, %s3854_s21  ;;  %p43_p4 = scmp.eq.s32.totalorder %s3939_s25, 0 }
   0xa   : > { %s3955_s30 = scalar_select %p27_p1, %s3862_s23, %s29_s28  }
   0xb   : > { %p38_p5 = por %p37_p2, %p36_p0  ;;  %p3957_p6 = por %p43_p4, %p42_p3 }
   0xc   : > { %p171_p7 = scmp.eq.s32.totalorder %s3939_s25, 1  ;;  %p177_p8 = scmp.eq.s32.totalorder %s3327_s26, 1 }
   0xd   : > { %s5535_s7 = scalar_select %p3957_p6, 1, 0 }
   0xe   : > { %p3725_p10 = scmp.lt.s32.totalorder %s3866_s24, 2  ;;  %p3964_p11 = por %p171_p7, %p36_p0 }
   0xf   : > { %p3968_p12 = por %p177_p8, %p42_p3  ;;  %s212_s10 = sand.u32 1, %s3862_s23  }
  0x10   : > { %s5536_s8 = scalar_select %p3964_p11, 1, 0 }
  0x11   : > { %s5537_s9 = scalar_select %p3968_p12, 1, 0 }
  0x12   : > { %s3709_s11 = smul.u32 640, %s3866_s24  ;;  %p3979_p13 = pnand %p3725_p10, %p38_p5 }
  0x13   : > { %s3708_s12 = smul.u32 40, %s212_s10  ;;  %s213_s19 = scalar_lea.sflag [#allocation4], %s212_s10 }
  0x14   : > { %s3977_s15 = scalar_lea.hbm %s5499_s0, %s3709_s11  ;;  %p3776_p3 = pneg %p3979_p13 }
  0x15   : > { %s216_s17 = scalar_lea.vmem [#allocation3], %s3708_s12  ;;  %s3774_s20 = scalar_lea.hbm %s3977_s15, 640 }
  0x16   : > { %s224_s18 = sshll.u32 %s216_s17, 4  ;;  %p3775_p2 = scmp.ne.s32.totalorder %s3977_s15, %s3774_s20  ;;  %s225_s18 = int_to_ptr.vmem [resolvable:$true] %s224_s18 }
  0x17   : > { %s3779_s29 = scalar_lea.hbm %s5499_s0, 1280  ;;  %p3780_p5 = scmp.lt.s32.totalorder %s3977_s15, %s5499_s0 }
  0x18   : > { %p3777_p4 = pnand %p3776_p3, %p3775_p2  ;;  %p3781_p8 = scmp.lt.s32.totalorder %s3779_s29, %s3774_s20 }
  0x1a   : > { %p3778_p7 = pneg %p3777_p4  ;;  %p3782_p10 = por %p3781_p8, %p3780_p5 }
  0x1c   : > { %p3783_p9 = pnand %p3782_p10, %p3778_p7 }
  0x1e   : > { %3786 = shalt.err (!%p3783_p9)
}
  0x1f   : > { %s3787_s12 = scalar_lea.vmem %s225_s18, 640  ;;  %s3868_s10 = smov [#allocation3]  }
  0x20   : > { %p3788_p0 = scmp.ne.s32.totalorder %s225_s18, %s3787_s12  ;;  %s3792_s14 = sshll.u32 %s3868_s10, 4  ;;  %s3793_s14 = int_to_ptr.vmem [resolvable:$false] %s3792_s14 }
  0x21   : > { %s3794_s17 = scalar_lea.vmem %s3793_s14, 1280  ;;  %p3795_p2 = scmp.lt.s32.totalorder %s225_s18, %s3793_s14 }
  0x22   : > { %p3790_p1 = pnand %p3788_p0, %p3776_p3  ;;  %p3796_p4 = scmp.lt.s32.totalorder %s3794_s17, %s3787_s12 }
  0x24   : > { %p3791_p12 = pneg %p3790_p1  ;;  %p3797_p11 = por %p3796_p4, %p3795_p2 }
  0x26   : > { %p3798_p6 = pnand %p3797_p11, %p3791_p12 }
  0x28   : > { %3801 = shalt.err (!%p3798_p6)
}
  0x29   : > { %3720 = dma.hbm_to_vmem [thread:$0]  (!%p3979_p13), %s3977_s15, 640, %s225_s18, %s213_s19  }
  0x2a   : > { %p5539_p9 = scmp.lt.s32.totalorder %s3866_s24, 3  ;;  %p5540_p7 = scmp.ge.s32.totalorder %s3866_s24, 1 }
  0x2c   : > { %p230_p5 = pnand %p5540_p7, %p5539_p9 }
  0x2d   : > { %s4004_s20 = sand.u32 (!%p230_p5), 1, %s3858_s22   ;;  %p5541_p6 = scmp.ne.s32.totalorder (!%p230_p5), %s5535_s7, 0 }
  0x2e   : > { %233 = sbr.rel (%p230_p5) target bundleno = 1274 (0x4fa), region = 44  ;;  %s236_s28 = scalar_lea.sflag (!%p230_p5), [#allocation4], %s4004_s20 }
  0x2f   : > { %s3710_s26 = smul.u32 (!%p230_p5), 40, %s4004_s20 }
  0x31   : > { %s4008_s29 = scalar_lea.vmem (!%p230_p5), [#allocation3], %s3710_s26 }
  0x33   : > { %3845 = dma.done.wait (%p5541_p6), %s236_s28, 640  }
  0x34   : > { %3847 = vsyncadd (%p5541_p6), %s236_s28, 4294966656  ;;  %s3711_s15 = smul.u32 24, %s4004_s20  ;;  %p3332_p11 = scmp.ne.s32.totalorder %s3939_s25, 0 }
  0x36   : > { %s4015_s16 = scalar_lea.vmem [#allocation6], %s3711_s15  ;;  %271 = sbr.rel (%p3332_p11) target bundleno = 61 (0x3d), region = 52 }
  0x3b   : > { %v3869_v0 = vmov 0.0  }
  0x3c   : > { %272 = vst [vmem:[#allocation2 + $0x20] sm:$0xff] %v3869_v0  ;;  %273 = vst [vmem:[#allocation2] sm:$0xff] %v3869_v0 }
  0x3d PF: > { %v4019_v1 = vld [vmem:[%s4008_s29 + $0x18] sm:$0xff]  ;;  %v279_v2 = vld [vmem:[%s4008_s29 + $0x8] sm:$0xff]  ;;  %s3870_s18 = smov 90   ;;  %v4026_v3 = vld [vmem:[%s4008_s29 + $0x10] sm:$0xff]  ;;  %s3871_s7 = smov 91   ;;  %vm380_vm0 = vcmask 736256  }
  0x3e   : > { %376 = vrot.lane.b32.xlu1 %v4019_v1, %s3870_s18  ;;  %372 = vrot.lane.b32.xlu0 %v279_v2, %s3870_s18  ;;  %s3872_s19 = smov 92   ;;  %s3873_s11 = smov 108   ;;  %v4056_v4 = vld [vmem:[%s4008_s29] sm:$0xff]  ;;  %vm368_vm1 = vcmask 744448   ;;  %vm356_vm2 = vcmask 752640   ;;  %vm344_vm3 = vcmask 883712  }
  0x3f   : > { %s3874_s13 = smov 109   ;;  %s3875_s12 = smov 110   ;;  %v282_v5 = vld [vmem:[%s4008_s29 + $0x20] sm:$0xff]  ;;  %vm329_vm4 = vcmask 891904   ;;  %vm319_vm5 = vcmask 900096   ;;  %vm307_vm6 = vcmask 1031168  }
  0x40   : > { %s3876_s10 = smov 126   ;;  %s3877_s14 = smov 127   ;;  %vm295_vm7 = vcmask 1039360   ;;  %v5530_v52 = vmov 0.0   ;;  %vm463_vm8 = vcmask 154624   ;;  %vm518_vm9 = vcmask 588800  }
  0x41   : > { %s3878_s17 = smov 19   ;;  %604 = vmatprep.mubr.f32.mxu0 %v5530_v52  ;;  %770 = vmatprep.mubr.f32.mxu1 %v5530_v52  ;;  %vm3881_vm10 = vmmov 0   ;;  %s3243_s26 = scalar_lea.sflag [#allocation5], %s4004_s20 }
  0x42   : > { %360 = vrot.lane.b32.xlu1 %v279_v2, %s3871_s7  ;;  %374 = vrot.lane.b32.xlu0 %v4026_v3, %s3870_s18  ;;  %p5570_p13 = scmp.ne.s32.totalorder %s5536_s8, 0  ;;  %s3882_s15 = smov [#allocation6]  }
  0x46   : > { %364 = vrot.lane.b32.xlu1 %v4019_v1, %s3871_s7  ;;  %362 = vrot.lane.b32.xlu0 %v4026_v3, %s3871_s7 }
  0x4a   : > { %350 = vrot.lane.b32.xlu1 %v4026_v3, %s3872_s19  ;;  %348 = vrot.lane.b32.xlu0 %v279_v2, %s3872_s19 }
  0x4e   : > { %336 = vrot.lane.b32.xlu1 %v279_v2, %s3873_s11  ;;  %352 = vrot.lane.b32.xlu0 %v4019_v1, %s3872_s19 }
  0x52   : > { %340 = vrot.lane.b32.xlu1 %v4019_v1, %s3873_s11  ;;  %338 = vrot.lane.b32.xlu0 %v4026_v3, %s3873_s11 }
  0x56   : > { %325 = vrot.lane.b32.xlu1 %v4026_v3, %s3874_s13  ;;  %323 = vrot.lane.b32.xlu0 %v279_v2, %s3874_s13 }
  0x5a   : > { %313 = vrot.lane.b32.xlu1 %v279_v2, %s3875_s12  ;;  %327 = vrot.lane.b32.xlu0 %v4019_v1, %s3874_s13 }
  0x5e   : > { %317 = vrot.lane.b32.xlu1 %v4019_v1, %s3875_s12  ;;  %315 = vrot.lane.b32.xlu0 %v4026_v3, %s3875_s12 }
  0x62   : > { %301 = vrot.lane.b32.xlu1 %v279_v2, %s3876_s10  ;;  %311 = vrot.lane.b32.xlu0 %v4056_v4, %s3875_s12 }
  0x66   : > { %305 = vrot.lane.b32.xlu1 %v4019_v1, %s3876_s10  ;;  %303 = vrot.lane.b32.xlu0 %v4026_v3, %s3876_s10 }
  0x6a   : > { %289 = vrot.lane.b32.xlu1 %v279_v2, %s3877_s14  ;;  %299 = vrot.lane.b32.xlu0 %v4056_v4, %s3876_s10 }
  0x6e   : > { %293 = vrot.lane.b32.xlu1 %v4019_v1, %s3877_s14  ;;  %291 = vrot.lane.b32.xlu0 %v4026_v3, %s3877_s14 }
  0x72   : > { %378 = vrot.lane.b32.xlu1 %v282_v5, %s3870_s18  ;;  %287 = vrot.lane.b32.xlu0 %v4056_v4, %s3877_s14 }
  0x76   : > { %354 = vrot.lane.b32.xlu1 %v282_v5, %s3872_s19  ;;  %366 = vrot.lane.b32.xlu0 %v282_v5, %s3871_s7 }
  0x7a   : > { %342 = vrot.lane.b32.xlu1 %v282_v5, %s3873_s11 }
  0x7e   : > { %393 = vrot.lane.b32.xlu1 %v279_v2, %s3878_s17 }
  0xb0   : > { %v4080_v6 = vpop.permute.xlu1 %376  ;;  %v373_v7 = vpop.permute.xlu0 %372 }
  0xb1   : > { %455 = vrot.lane.b32.xlu0 %v373_v7, %s3878_s17 }
  0xb4   : > { %v361_v8 = vpop.permute.xlu1 %360  ;;  %v375_v9 = vpop.permute.xlu0 %374 }
  0xb5   : > { %447 = vrot.lane.b32.xlu0 %v361_v8, %s3878_s17  ;;  %v381_v18 = vsel %vm380_vm0, %v373_v7, %v375_v9  ;;  %v382_v24 = vsel %vm380_vm0, %v375_v9, %v4080_v6  ;;  %v385_v9 = vld [vmem:[%s5501_s2] sm:$0xff] }
  0xb8   : > { %v4084_v10 = vpop.permute.xlu1 %364  ;;  %v363_v11 = vpop.permute.xlu0 %362 }
  0xb9   : > { %v369_v21 = vsel %vm368_vm1, %v361_v8, %v363_v11  ;;  %v370_v28 = vsel %vm368_vm1, %v363_v11, %v4084_v10 }
  0xbc   : > { %v351_v12 = vpop.permute.xlu1 %350  ;;  %v349_v13 = vpop.permute.xlu0 %348 }
  0xbd   : > { %439 = vrot.lane.b32.xlu1 %v349_v13, %s3878_s17  ;;  %v357_v33 = vsel %vm356_vm2, %v349_v13, %v351_v12 }
  0xc0   : > { %v337_v14 = vpop.permute.xlu1 %336  ;;  %v4087_v15 = vpop.permute.xlu0 %352 }
  0xc1   : > { %431 = vrot.lane.b32.xlu0 %v337_v14, %s3878_s17  ;;  %v358_v25 = vsel %vm356_vm2, %v351_v12, %v4087_v15 }
  0xc4   : > { %v4090_v16 = vpop.permute.xlu1 %340  ;;  %v339_v17 = vpop.permute.xlu0 %338 }
  0xc5   : > { %457 = vrot.lane.b32.xlu0 %v381_v18, %s3878_s17  ;;  %v345_v29 = vsel %vm344_vm3, %v337_v14, %v339_v17  ;;  %v346_v37 = vsel %vm344_vm3, %v339_v17, %v4090_v16 }
  0xc8   : > { %v326_v19 = vpop.permute.xlu1 %325  ;;  %v324_v20 = vpop.permute.xlu0 %323 }
  0xc9   : > { %423 = vrot.lane.b32.xlu1 %v324_v20, %s3878_s17  ;;  %449 = vrot.lane.b32.xlu0 %v369_v21, %s3878_s17  ;;  %v330_v39 = vsel %vm329_vm4, %v324_v20, %v326_v19 }
  0xcc   : > { %v314_v22 = vpop.permute.xlu1 %313  ;;  %v4097_v23 = vpop.permute.xlu0 %327 }
  0xcd   : > { %459 = vrot.lane.b32.xlu1 %v382_v24, %s3878_s17  ;;  %443 = vrot.lane.b32.xlu0 %v358_v25, %s3878_s17  ;;  %v331_v30 = vsel %vm329_vm4, %v326_v19, %v4097_v23 }
  0xd0   : > { %v4105_v26 = vpop.permute.xlu1 %317  ;;  %v316_v27 = vpop.permute.xlu0 %315 }
  0xd1   : > { %451 = vrot.lane.b32.xlu1 %v370_v28, %s3878_s17  ;;  %433 = vrot.lane.b32.xlu0 %v345_v29, %s3878_s17  ;;  %v321_v34 = vsel %vm319_vm5, %v314_v22, %v316_v27  ;;  %v322_v44 = vsel %vm319_vm5, %v316_v27, %v4105_v26 }
  0xd4   : > { %v302_v31 = vpop.permute.xlu1 %301  ;;  %v312_v32 = vpop.permute.xlu0 %311 }
  0xd5   : > { %441 = vrot.lane.b32.xlu1 %v357_v33, %s3878_s17  ;;  %427 = vrot.lane.b32.xlu0 %v331_v30, %s3878_s17  ;;  %v320_v40 = vsel %vm319_vm5, %v312_v32, %v314_v22 }
  0xd8   : > { %v306_v35 = vpop.permute.xlu1 %305  ;;  %v304_v36 = vpop.permute.xlu0 %303 }
  0xd9   : > { %435 = vrot.lane.b32.xlu1 %v346_v37, %s3878_s17  ;;  %417 = vrot.lane.b32.xlu0 %v321_v34, %s3878_s17  ;;  %v310_v42 = vsel %vm307_vm6, %v304_v36, %v306_v35  ;;  %v309_v47 = vsel %vm307_vm6, %v302_v31, %v304_v36 }
  0xdc   : > { %v300_v38 = vpop.permute.xlu0 %299  ;;  %v290_v41 = vpop.permute.xlu1 %289 }
  0xdd   : > { %425 = vrot.lane.b32.xlu1 %v330_v39, %s3878_s17  ;;  %415 = vrot.lane.b32.xlu0 %v320_v40, %s3878_s17  ;;  %v308_v50 = vsel %vm307_vm6, %v300_v38, %v302_v31 }
  0xe0   : > { %v292_v43 = vpop.permute.xlu0 %291  ;;  %v294_v46 = vpop.permute.xlu1 %293 }
  0xe1   : > { %419 = vrot.lane.b32.xlu1 %v322_v44, %s3878_s17  ;;  %411 = vrot.lane.b32.xlu0 %v310_v42, %s3878_s17  ;;  %v297_v45 = vsel %vm295_vm7, %v290_v41, %v292_v43  ;;  %v298_v53 = vsel %vm295_vm7, %v292_v43, %v294_v46 }
  0xe4   : > { %v288_v48 = vpop.permute.xlu0 %287  ;;  %v379_v51 = vpop.permute.xlu1 %378 }
  0xe5   : > { %409 = vrot.lane.b32.xlu1 %v309_v47, %s3878_s17  ;;  %401 = vrot.lane.b32.xlu0 %v297_v45, %s3878_s17  ;;  %v296_v49 = vsel %vm295_vm7, %v288_v48, %v290_v41  ;;  %v383_v55 = vsel %vm380_vm0, %v4080_v6, %v379_v51  ;;  %v384_v51 = vld [vmem:[%s5500_s1] sm:$0xff] }
  0xe8   : > { %v355_v54 = vpop.permute.xlu1 %354  ;;  %v367_v56 = vpop.permute.xlu0 %366 }
  0xe9   : > { %407 = vrot.lane.b32.xlu1 %v308_v50, %s3878_s17  ;;  %399 = vrot.lane.b32.xlu0 %v296_v49, %s3878_s17  ;;  %v359_v57 = vsel %vm356_vm2, %v4087_v15, %v355_v54  ;;  %v371_v58 = vsel %vm368_vm1, %v4084_v10, %v367_v56 }
  0xec   : > { %v343_v59 = vpop.permute.xlu1 %342 }
  0xed   : > { %403 = vrot.lane.b32.xlu1 %v298_v53, %s3878_s17  ;;  %395 = vrot.lane.b32.xlu0 %v4026_v3, %s3878_s17  ;;  %v347_v60 = vsel %vm344_vm3, %v4090_v16, %v343_v59 }
  0xf0   : > { %v4167_v63 = vpop.permute.xlu1 %393 }
  0xf1   : > { %391 = vrot.lane.b32.xlu1 %v4056_v4, %s3878_s17  ;;  %461 = vrot.lane.b32.xlu0 %v383_v55, %s3878_s17 }
  0xf5   : > { %445 = vrot.lane.b32.xlu0 %v359_v57, %s3878_s17  ;;  %453 = vrot.lane.b32.xlu1 %v371_v58, %s3878_s17 }
  0xf9   : > { %429 = vrot.lane.b32.xlu0 %v4097_v23, %s3878_s17  ;;  %437 = vrot.lane.b32.xlu1 %v347_v60, %s3878_s17 }
  0xfd   : > { %413 = vrot.lane.b32.xlu0 %v306_v35, %s3878_s17  ;;  %421 = vrot.lane.b32.xlu1 %v4105_v26, %s3878_s17 }
 0x101   : > { %397 = vrot.lane.b32.xlu0 %v4019_v1, %s3878_s17  ;;  %405 = vrot.lane.b32.xlu1 %v294_v46, %s3878_s17  ;;  %v3880_v1 = vmov 0  }
 0x102   : > { %3772 = vset.pattern.permute.xlu1 %v3880_v1  ;;  %3773 = vset.pattern.permute.xlu0 %v3880_v1 }
 0x105   : > { %388 = vperm.xlu1 %3772, %v385_v9  }
 0x123   : > { %v456_v61 = vpop.permute.xlu0 %455 }
 0x127   : > { %v448_v62 = vpop.permute.xlu0 %447 }
 0x12f   : > { %v440_v2 = vpop.permute.xlu1 %439 }
 0x133   : > { %v432_v0 = vpop.permute.xlu0 %431 }
 0x137   : > { %v458_v3 = vpop.permute.xlu0 %457 }
 0x138   : > { %v488_v4 = vsel %vm463_vm8, %v456_v61, %v458_v3 }
 0x139   : > { %v4170_v5 = vand.u32 4294901760, %v488_v4 }
 0x13b   : > { %v4172_v6 = vpop.permute.xlu1 %423  ;;  %v450_v7 = vpop.permute.xlu0 %449  ;;  %v4179_v10 = vsub.f32 %v488_v4, %v4170_v5 }
 0x13c   : > { %v485_v8 = vsel %vm463_vm8, %v448_v62, %v450_v7 }
 0x13d   : > { %v4181_v11 = vand.u32 4294901760, %v485_v8  ;;  %v638_v17 = vand.u32 4294901760, %v4179_v10 }
 0x13f   : > { %v4183_v12 = vpop.permute.xlu1 %459  ;;  %v4185_v13 = vpop.permute.xlu0 %443  ;;  %v4192_v16 = vsub.f32 %v485_v8, %v4181_v11  ;;  %v639_v26 = vsub.f32 %v4179_v10, %v638_v17 }
 0x140   : > { %v489_v14 = vsel %vm463_vm8, %v458_v3, %v4183_v12 }
 0x141   : > { %v4189_v15 = vand.u32 4294901760, %v489_v14  ;;  %v650_v27 = vand.u32 4294901760, %v4192_v16  ;;  %v640_v39 = vand.u32 4294901760, %v639_v26 }
 0x143   : > { %v4196_v18 = vsub.f32 %v489_v14, %v4189_v15  ;;  %v4198_v19 = vpop.permute.xlu1 %451  ;;  %537 = vmatprep.subr.mxu0 %v4189_v15  ;;  %v434_v20 = vpop.permute.xlu0 %433  ;;  %v651_v40 = vsub.f32 %v4192_v16, %v650_v27 }
 0x144   : > { %v486_v21 = vsel %vm463_vm8, %v450_v7, %v4198_v19  ;;  %v479_v22 = vsel %vm463_vm8, %v432_v0, %v434_v20  ;;  %539 = vmatpush1.msra.mxu0 %v4170_v5  ;;  %v520_v0 = vsel %vm518_vm9, %v384_v51, 0 }
 0x145   : > { %v4205_v23 = vand.u32 4294901760, %v486_v21  ;;  %v632_v24 = vand.u32 4294901760, %v4196_v18  ;;  %v4208_v25 = vand.u32 4294901760, %v479_v22  ;;  %v652_v53 = vand.u32 4294901760, %v651_v40 }
 0x147   : > { %v4215_v28 = vsub.f32 %v486_v21, %v4205_v23  ;;  %v442_v29 = vpop.permute.xlu1 %441  ;;  %541 = vmatprep.subr.mxu0 %v4205_v23  ;;  %v4218_v30 = vpop.permute.xlu0 %427  ;;  %v633_v31 = vsub.f32 %v4196_v18, %v632_v24  ;;  %v4233_v38 = vsub.f32 %v479_v22, %v4208_v25 }
 0x148   : > { %v482_v32 = vsel %vm463_vm8, %v440_v2, %v442_v29  ;;  %v483_v33 = vsel %vm463_vm8, %v442_v29, %v4185_v13  ;;  %543 = vmatpush1.msra.mxu0 %v4181_v11 }
 0x149   : > { %v4227_v34 = vand.u32 4294901760, %v483_v33  ;;  %v4229_v35 = vand.u32 4294901760, %v482_v32  ;;  %v634_v36 = vand.u32 4294901760, %v633_v31  ;;  %v644_v37 = vand.u32 4294901760, %v4215_v28 }
 0x14a   : > { %v5513_v54 = vand.u32 4294901760, %v4233_v38  ;;  %v4308_v31 = vand.u32 4294901760, %v520_v0 }
 0x14b   : > { %v4239_v41 = vsub.f32 %v483_v33, %v4227_v34  ;;  %v4242_v42 = vsub.f32 %v482_v32, %v4229_v35  ;;  %v4244_v43 = vpop.permute.xlu1 %435  ;;  %545 = vmatprep.subr.mxu0 %v4227_v34  ;;  %635 = vmatprep.subr.mxu1 %v634_v36  ;;  %v418_v44 = vpop.permute.xlu0 %417  ;;  %v645_v45 = vsub.f32 %v4215_v28, %v644_v37 }
 0x14c   : > { %v480_v46 = vsel %vm463_vm8, %v434_v20, %v4244_v43  ;;  %547 = vmatpush1.msra.mxu0 %v4229_v35  ;;  %641 = vmatpush1.msra.mxu1 %v640_v39  ;;  %v675_v1 = vsub.f32 %v4233_v38, %v5513_v54 }
 0x14d   : > { %v4253_v47 = vand.u32 4294901760, %v480_v46  ;;  %v646_v48 = vand.u32 4294901760, %v645_v45  ;;  %v5517_v49 = vand.u32 4294901760, %v4239_v41  ;;  %v5515_v50 = vand.u32 4294901760, %v4242_v42 }
 0x14f   : > { %v4262_v55 = vsub.f32 %v480_v46, %v4253_v47  ;;  %v426_v56 = vpop.permute.xlu1 %425  ;;  %549 = vmatprep.subr.mxu0 %v4253_v47  ;;  %647 = vmatprep.subr.mxu1 %v646_v48  ;;  %v416_v57 = vpop.permute.xlu0 %415  ;;  %v657_v58 = vsub.f32 %v4239_v41, %v5517_v49  ;;  %v663_v59 = vsub.f32 %v4242_v42, %v5515_v50  ;;  %v676_v48 = vand.u32 4294901760, %v675_v1 }
 0x150   : > { %v476_v60 = vsel %vm463_vm8, %v4172_v6, %v426_v56  ;;  %v477_v61 = vsel %vm463_vm8, %v426_v56, %v4218_v30  ;;  %v473_v62 = vsel %vm463_vm8, %v416_v57, %v418_v44  ;;  %551 = vmatpush1.msra.mxu0 %v4208_v25  ;;  %653 = vmatpush1.msra.mxu1 %v652_v53 }
 0x151   : > { %v4278_v2 = vand.u32 4294901760, %v477_v61  ;;  %v4280_v3 = vand.u32 4294901760, %v476_v60  ;;  %v4282_v4 = vand.u32 4294901760, %v473_v62  ;;  %v658_v7 = vand.u32 4294901760, %v657_v58 }
 0x152   : > { %v664_v8 = vand.u32 4294901760, %v663_v59  ;;  %v5514_v6 = vand.u32 4294901760, %v4262_v55  ;;  %v4329_v57 = vsub.f32 %v520_v0, %v4308_v31 }
 0x153   : > { %v4289_v9 = vsub.f32 %v477_v61, %v4278_v2  ;;  %v4292_v14 = vsub.f32 %v476_v60, %v4280_v3  ;;  %v4295_v20 = vsub.f32 %v473_v62, %v4282_v4  ;;  %v4297_v21 = vpop.permute.xlu1 %419  ;;  %553 = vmatprep.subr.mxu0 %v4278_v2  ;;  %659 = vmatprep.subr.mxu1 %v658_v7  ;;  %v4300_v22 = vpop.permute.xlu0 %411 }
 0x154   : > { %v474_v26 = vsel %vm463_vm8, %v418_v44, %v4297_v21  ;;  %555 = vmatpush1.msra.mxu0 %v4280_v3  ;;  %665 = vmatpush1.msra.mxu1 %v664_v8  ;;  %v669_v29 = vsub.f32 %v4262_v55, %v5514_v6 }
 0x155   : > { %v4310_v32 = vand.u32 4294901760, %v474_v26  ;;  %v5512_v33 = vand.u32 4294901760, %v4289_v9  ;;  %v5510_v36 = vand.u32 4294901760, %v4292_v14  ;;  %v5508_v40 = vand.u32 4294901760, %v4295_v20 }
 0x156   : > { %v670_v39 = vand.u32 4294901760, %v669_v29 }
 0x157   : > { %v4316_v44 = vsub.f32 %v474_v26, %v4310_v32  ;;  %v410_v45 = vpop.permute.xlu1 %409  ;;  %557 = vmatprep.subr.mxu0 %v4310_v32  ;;  %v402_v46 = vpop.permute.xlu0 %401  ;;  %v681_v51 = vsub.f32 %v4289_v9, %v5512_v33  ;;  %v687_v53 = vsub.f32 %v4292_v14, %v5510_v36  ;;  %v699_v62 = vsub.f32 %v4295_v20, %v5508_v40 }
 0x158   : > { %v471_v56 = vsel %vm463_vm8, %v410_v45, %v4300_v22  ;;  %671 = vmatprep.subr.mxu1 %v670_v39  ;;  %559 = vmatpush1.msra.mxu0 %v4282_v4  ;;  %v4347_v39 = vand.u32 4294901760, %v4329_v57 }
 0x159   : > { %v4331_v58 = vand.u32 4294901760, %v471_v56  ;;  %677 = vmatpush1.msra.mxu1 %v676_v48  ;;  %v682_v59 = vand.u32 4294901760, %v681_v51  ;;  %v688_v60 = vand.u32 4294901760, %v687_v53  ;;  %v5509_v61 = vand.u32 4294901760, %v4316_v44 }
 0x15b   : > { %v4338_v7 = vsub.f32 %v471_v56, %v4331_v58  ;;  %v408_v8 = vpop.permute.xlu1 %407  ;;  %561 = vmatprep.subr.mxu0 %v4331_v58  ;;  %683 = vmatprep.subr.mxu1 %v682_v59  ;;  %v400_v0 = vpop.permute.xlu0 %399  ;;  %v693_v1 = vsub.f32 %v4316_v44, %v5509_v61  ;;  %v700_v59 = vand.u32 4294901760, %v699_v62 }
 0x15c   : > { %v470_v26 = vsel %vm463_vm8, %v408_v8, %v410_v45  ;;  %v467_v29 = vsel %vm463_vm8, %v400_v0, %v402_v46  ;;  %689 = vmatpush1.msra.mxu1 %v688_v60 }
 0x15d   : > { %v4349_v48 = vand.u32 4294901760, %v470_v26  ;;  %v4351_v51 = vand.u32 4294901760, %v467_v29  ;;  %v694_v53 = vand.u32 4294901760, %v693_v1  ;;  %v5511_v56 = vand.u32 4294901760, %v4338_v7 }
 0x15e   : > { %v608_v1 = vsub.f32 %v4329_v57, %v4347_v39 }
 0x15f   : > { %v4355_v40 = vsub.f32 %v470_v26, %v4349_v48  ;;  %v4358_v61 = vsub.f32 %v467_v29, %v4351_v51  ;;  %v4360_v45 = vpop.permute.xlu1 %403  ;;  %563 = vmatpush1.msra.mxu0 %v4349_v48  ;;  %695 = vmatprep.subr.mxu1 %v694_v53  ;;  %v4363_v60 = vpop.permute.xlu0 %395  ;;  %v705_v8 = vsub.f32 %v4338_v7, %v5511_v56 }
 0x160   : > { %v468_v62 = vsel %vm463_vm8, %v402_v46, %v4360_v45  ;;  %v465_v0 = vsel %vm463_vm8, %v4167_v63, %v4363_v60  ;;  %701 = vmatpush1.msra.mxu1 %v700_v59  ;;  %v4394_v6 = vand.u32 4294901760, %v608_v1 }
 0x161   : > { %v4375_v26 = vand.u32 4294901760, %v468_v62  ;;  %v4377_v29 = vand.u32 4294901760, %v465_v0  ;;  %v706_v53 = vand.u32 4294901760, %v705_v8  ;;  %v5516_v36 = vand.u32 4294901760, %v4355_v40 }
 0x162   : > { %v722_v56 = vand.u32 4294901760, %v4358_v61 }
 0x163   : > { %v4382_v33 = vsub.f32 %v468_v62, %v4375_v26  ;;  %v4385_v46 = vsub.f32 %v465_v0, %v4377_v29  ;;  %v392_v54 = vpop.permute.xlu1 %391  ;;  %565 = vmatprep.subr.mxu0 %v4375_v26  ;;  %707 = vmatprep.subr.mxu1 %v706_v53  ;;  %v711_v59 = vsub.f32 %v4355_v40, %v5516_v36 }
 0x164   : > { %v464_v8 = vsel %vm463_vm8, %v392_v54, %v4167_v63  ;;  %567 = vmatpush1.msra.mxu0 %v4351_v51  ;;  %v723_v53 = vsub.f32 %v4358_v61, %v722_v56 }
 0x165   : > { %v4396_v62 = vand.u32 4294901760, %v464_v8  ;;  %569 = vmatprep.subr.mxu0 %v4377_v29  ;;  %v712_v0 = vand.u32 4294901760, %v711_v59  ;;  %v716_v50 = vand.u32 4294901760, %v4382_v33  ;;  %v5518_v36 = vand.u32 4294901760, %v4385_v46 }
 0x166   : > { %v724_v59 = vand.u32 4294901760, %v723_v53 }
 0x167   : > { %v4405_v49 = vsub.f32 %v464_v8, %v4396_v62  ;;  %571 = vmatpush1.msra.mxu0 %v4396_v62  ;;  %713 = vmatpush1.msra.mxu1 %v712_v0  ;;  %v717_v63 = vsub.f32 %v4382_v33, %v716_v50  ;;  %v729_v54 = vsub.f32 %v4385_v46, %v5518_v36  ;;  %v454_v53 = vpop.permute.xlu1 %453 }
 0x168   : > { %794 = vmatprep.subr.mxu0 %v4196_v18  ;;  %610 = vmatmul.mubr.f32.vlgmr.msra.gmra.mxu0 %v4394_v6 }
 0x169   : > { %797 = vmatpush1.msra.mxu0 %v4179_v10  ;;  %v718_v1 = vand.u32 4294901760, %v717_v63  ;;  %878 = vmatprep.mubr.f32.mxu0 %v5530_v52  ;;  %v734_v8 = vand.u32 4294901760, %v4405_v49  ;;  %v730_v0 = vand.u32 4294901760, %v729_v54  ;;  %v5543_v10 = vand.u32 4294901760, %v4242_v42 }
 0x16a   : > { %800 = vmatprep.subr.mxu0 %v4215_v28 }
 0x16b   : > { %719 = vmatprep.subr.mxu1 %v718_v1  ;;  %803 = vmatpush1.msra.mxu0 %v4192_v16  ;;  %v735_v36 = vsub.f32 %v4405_v49, %v734_v8  ;;  %v5545_v16 = vand.u32 4294901760, %v4233_v38  ;;  %v438_v28 = vpop.permute.xlu1 %437 }
 0x16c   : > { %725 = vmatpush1.msra.mxu1 %v724_v59  ;;  %806 = vmatprep.subr.mxu0 %v4239_v41 }
 0x16d   : > { %731 = vmatprep.subr.mxu1 %v730_v0  ;;  %809 = vmatpush1.msra.mxu0 %v4242_v42  ;;  %v736_v63 = vand.u32 4294901760, %v735_v36  ;;  %v462_v36 = vpop.permute.xlu0 %461 }
 0x16e   : > { %812 = vmatprep.subr.mxu0 %v4262_v55 }
 0x16f   : > { %815 = vmatpush1.msra.mxu0 %v4233_v38  ;;  %737 = vmatpush1.msra.mxu1 %v736_v63  ;;  %v5548_v38 = vand.u32 4294901760, %v4316_v44 }
 0x170   : > { %818 = vmatprep.subr.mxu0 %v4289_v9  ;;  %772 = vmatmul.mubr.f32.vlgmr.msra.gmra.mxu1 %v4308_v31 }
 0x171   : > { %902 = vmatprep.subr.mxu1 %v4189_v15  ;;  %821 = vmatpush1.msra.mxu0 %v4292_v14  ;;  %v446_v18 = vpop.permute.xlu0 %445 }
 0x172   : > { %904 = vmatpush1.msra.mxu1 %v4170_v5  ;;  %824 = vmatprep.subr.mxu0 %v4316_v44 }
 0x173   : > { %906 = vmatprep.subr.mxu1 %v4205_v23  ;;  %827 = vmatpush1.msra.mxu0 %v4295_v20 }
 0x174   : > { %908 = vmatpush1.msra.mxu1 %v4181_v11  ;;  %830 = vmatprep.subr.mxu0 %v4338_v7 }
 0x175   : > { %910 = vmatprep.subr.mxu1 %v4227_v34  ;;  %833 = vmatpush1.msra.mxu0 %v4355_v40  ;;  %v430_v42 = vpop.permute.xlu0 %429 }
 0x176   : > { %912 = vmatpush1.msra.mxu1 %v4229_v35  ;;  %836 = vmatprep.subr.mxu0 %v4382_v33 }
 0x177   : > { %914 = vmatprep.subr.mxu1 %v4253_v47  ;;  %839 = vmatpush1.msra.mxu0 %v4358_v61 }
 0x178   : > { %916 = vmatpush1.msra.mxu1 %v4208_v25  ;;  %842 = vmatprep.subr.mxu0 %v4385_v46 }
 0x179   : > { %918 = vmatprep.subr.mxu1 %v4278_v2  ;;  %845 = vmatpush1.msra.mxu0 %v4405_v49 }
 0x17a   : > { %920 = vmatpush1.msra.mxu1 %v4280_v3  ;;  %881 = vmatmul.mubr.f32.vlgmr.msra.gmra.mxu0 %v4329_v57 }
 0x17b   : > { %922 = vmatprep.subr.mxu1 %v4310_v32  ;;  %996 = vmatprep.subr.mxu0 %v632_v24  ;;  %v5542_v24 = vand.u32 4294901760, %v4239_v41  ;;  %v5547_v41 = vand.u32 4294901760, %v4292_v14  ;;  %v5551_v14 = vand.u32 4294901760, %v4355_v40 }
 0x17c   : > { %924 = vmatpush1.msra.mxu1 %v4282_v4  ;;  %1000 = vmatpush1.msra.mxu0 %v638_v17  ;;  %v5544_v17 = vand.u32 4294901760, %v4262_v55 }
 0x17d   : > { %926 = vmatprep.subr.mxu1 %v4331_v58  ;;  %1004 = vmatprep.subr.mxu0 %v644_v37  ;;  %v5546_v37 = vand.u32 4294901760, %v4289_v9  ;;  %v5549_v9 = vand.u32 4294901760, %v4295_v20 }
 0x17e   : > { %928 = vmatpush1.msra.mxu1 %v4349_v48  ;;  %1008 = vmatpush1.msra.mxu0 %v650_v27  ;;  %v490_v27 = vsel %vm463_vm8, %v4183_v12, %v462_v36  ;;  %v487_v12 = vsel %vm463_vm8, %v4198_v19, %v454_v53  ;;  %v422_v19 = vpop.permute.xlu1 %421 }
 0x17f   : > { %930 = vmatprep.subr.mxu1 %v4375_v26  ;;  %1012 = vmatprep.subr.mxu0 %v5542_v24  ;;  %v4486_v55 = vand.u32 4294901760, %v490_v27  ;;  %v4501_v44 = vand.u32 4294901760, %v487_v12  ;;  %v475_v20 = vsel %vm463_vm8, %v4297_v21, %v422_v19 }
 0x180   : > { %932 = vmatpush1.msra.mxu1 %v4351_v51  ;;  %1016 = vmatpush1.msra.mxu0 %v5543_v10  ;;  %v4551_v33 = vand.u32 4294901760, %v475_v20 }
 0x181   : > { %934 = vmatprep.subr.mxu1 %v4377_v29  ;;  %1020 = vmatprep.subr.mxu0 %v5544_v17 }
 0x182   : > { %936 = vmatpush1.msra.mxu1 %v4396_v62  ;;  %969 = vmatprep.mubr.f32.mxu1 %v5530_v52 }
 0x183   : > { %1024 = vmatpush1.msra.mxu0 %v5545_v16  ;;  %973 = vmatmul.mubr.f32.vlgmr.msra.gmra.mxu1 %v4347_v39 }
 0x184   : > { %1028 = vmatprep.subr.mxu0 %v5546_v37  ;;  %1120 = vmatprep.subr.mxu1 %v4189_v15  ;;  %v5550_v15 = vand.u32 4294901760, %v4338_v7 }
 0x185   : > { %1032 = vmatpush1.msra.mxu0 %v5547_v41  ;;  %1122 = vmatpush1.msra.mxu1 %v4170_v5  ;;  %v484_v5 = vsel %vm463_vm8, %v4185_v13, %v446_v18 }
 0x186   : > { %1036 = vmatprep.subr.mxu0 %v5548_v38  ;;  %1124 = vmatprep.subr.mxu1 %v4205_v23  ;;  %v481_v23 = vsel %vm463_vm8, %v4244_v43, %v438_v28  ;;  %v4514_v13 = vand.u32 4294901760, %v484_v5  ;;  %v4525_v43 = vsub.f32 %v487_v12, %v4501_v44 }
 0x187   : > { %1040 = vmatpush1.msra.mxu0 %v5549_v9  ;;  %1126 = vmatpush1.msra.mxu1 %v4181_v11  ;;  %v4507_v11 = vsub.f32 %v490_v27, %v4486_v55 }
 0x188   : > { %1044 = vmatprep.subr.mxu0 %v5550_v15  ;;  %1128 = vmatprep.subr.mxu1 %v4227_v34  ;;  %v414_v34 = vpop.permute.xlu0 %413  ;;  %v1303_v21 = vand.u32 4294901760, %v4525_v43 }
 0x189   : > { %1048 = vmatpush1.msra.mxu0 %v5551_v14  ;;  %1130 = vmatpush1.msra.mxu1 %v4229_v35  ;;  %v5552_v35 = vand.u32 4294901760, %v4385_v46 }
 0x18a   : > { %1052 = vmatprep.subr.mxu0 %v716_v50  ;;  %1132 = vmatprep.subr.mxu1 %v4253_v47  ;;  %v478_v50 = vsel %vm463_vm8, %v4218_v30, %v430_v42  ;;  %v4527_v47 = vand.u32 4294901760, %v481_v23  ;;  %v4537_v30 = vsub.f32 %v484_v5, %v4514_v13 }
 0x18b   : > { %1056 = vmatpush1.msra.mxu0 %v722_v56  ;;  %1134 = vmatpush1.msra.mxu1 %v4208_v25  ;;  %v1296_v25 = vand.u32 4294901760, %v4507_v11  ;;  %v4539_v49 = vand.u32 4294901760, %v478_v50  ;;  %v1304_v56 = vsub.f32 %v4525_v43, %v1303_v21 }
 0x18c   : > { %1060 = vmatprep.subr.mxu0 %v5552_v35  ;;  %1136 = vmatprep.subr.mxu1 %v4278_v2  ;;  %v406_v2 = vpop.permute.xlu1 %405  ;;  %v398_v40 = vpop.permute.xlu0 %397 }
 0x18d   : > { %1064 = vmatpush1.msra.mxu0 %v734_v8  ;;  %1097 = vmatprep.mubr.f32.mxu0 %v5530_v52  ;;  %v4564_v61 = vsub.f32 %v478_v50, %v4539_v49  ;;  %v1305_v0 = vand.u32 4294901760, %v1304_v56 }
 0x18e   : > { %1138 = vmatpush1.msra.mxu1 %v4280_v3  ;;  %1099 = vmatmul.mubr.f32.vlgmr.msra.gmra.mxu0 %v4308_v31  ;;  %v472_v3 = vsel %vm463_vm8, %v4300_v22, %v414_v34  ;;  %v469_v22 = vsel %vm463_vm8, %v4360_v45, %v406_v2  ;;  %v274_v2 = vld [vmem:[%s5504_s5] sm:$0x7] }
 0x18f   : > { %1140 = vmatprep.subr.mxu1 %v4310_v32  ;;  %3456 = vmatprep.subr.mxu0 %v5530_v52  ;;  %v4549_v32 = vsub.f32 %v481_v23, %v4527_v47  ;;  %v4566_v7 = vand.u32 4294901760, %v472_v3  ;;  %v4581_v46 = vand.u32 4294901760, %v469_v22 }
 0x190   : > { %1142 = vmatpush1.msra.mxu1 %v4282_v4  ;;  %3457 = vmatpush3.msra.mxu0 %v4486_v55  ;;  %v1297_v4 = vsub.f32 %v4507_v11, %v1296_v25 }
 0x191   : > { %1144 = vmatprep.subr.mxu1 %v4331_v58  ;;  %3458 = vmatprep.subr.mxu0 %v5530_v52  ;;  %v1310_v58 = vand.u32 4294901760, %v4537_v30  ;;  %v1317_v45 = vand.u32 4294901760, %v4549_v32  ;;  %v4592_v54 = vsub.f32 %v472_v3, %v4566_v7  ;;  %v4605_v8 = vsub.f32 %v469_v22, %v4581_v46 }
 0x192   : > { %1146 = vmatpush1.msra.mxu1 %v4349_v48  ;;  %3459 = vmatpush3.msra.mxu0 %v4501_v44  ;;  %v466_v48 = vsel %vm463_vm8, %v4363_v60, %v398_v40 }
 0x193   : > { %1148 = vmatprep.subr.mxu1 %v4375_v26  ;;  %3460 = vmatprep.subr.mxu0 %v5530_v52  ;;  %v4579_v26 = vsub.f32 %v475_v20, %v4551_v33  ;;  %v1311_v60 = vsub.f32 %v4537_v30, %v1310_v58  ;;  %v4594_v1 = vand.u32 4294901760, %v466_v48  ;;  %v1338_v36 = vand.u32 4294901760, %v4592_v54 }
 0x194   : > { %1150 = vmatpush1.msra.mxu1 %v4351_v51  ;;  %3461 = vmatpush3.msra.mxu0 %v4514_v13  ;;  %v1298_v51 = vand.u32 4294901760, %v1297_v4  ;;  %v1345_v10 = vand.u32 4294901760, %v4605_v8 }
 0x195   : > { %1152 = vmatprep.subr.mxu1 %v4377_v29  ;;  %3462 = vmatprep.subr.mxu0 %v5530_v52  ;;  %v1324_v29 = vand.u32 4294901760, %v4564_v61  ;;  %v1331_v59 = vand.u32 4294901760, %v4579_v26  ;;  %v4615_v53 = vsub.f32 %v466_v48, %v4594_v1  ;;  %v1312_v18 = vand.u32 4294901760, %v1311_v60 }
 0x196   : > { %1154 = vmatpush1.msra.mxu1 %v4396_v62  ;;  %1187 = vmatprep.mubr.f32.mxu1 %v5530_v52  ;;  %v1318_v62 = vsub.f32 %v4549_v32, %v1317_v45  ;;  %v1339_v16 = vsub.f32 %v4592_v54, %v1338_v36  ;;  %v1346_v37 = vsub.f32 %v4605_v8, %v1345_v10 }
 0x197   : > { %3463 = vmatpush3.msra.mxu0 %v4527_v47  ;;  %1189 = vmatmul.mubr.f32.vlgmr.msra.gmra.mxu1 %v4308_v31  ;;  %v1325_v63 = vsub.f32 %v4564_v61, %v1324_v29  ;;  %v1332_v24 = vsub.f32 %v4579_v26, %v1331_v59  ;;  %v1352_v27 = vand.u32 4294901760, %v4615_v53 }
 0x198   : > { %3464 = vmatprep.subr.mxu0 %v5530_v52  ;;  %3477 = vmatprep.subr.mxu1 %v5530_v52  ;;  %v1319_v17 = vand.u32 4294901760, %v1318_v62  ;;  %v1340_v38 = vand.u32 4294901760, %v1339_v16  ;;  %v1347_v12 = vand.u32 4294901760, %v1346_v37 }
 0x199   : > { %3465 = vmatpush3.msra.mxu0 %v4539_v49  ;;  %3478 = vmatpush3.msra.mxu1 %v1298_v51  ;;  %v1326_v28 = vand.u32 4294901760, %v1325_v63  ;;  %v1333_v41 = vand.u32 4294901760, %v1332_v24  ;;  %v1353_v42 = vsub.f32 %v4615_v53, %v1352_v27 }
 0x19a   : > { %3466 = vmatprep.subr.mxu0 %v5530_v52  ;;  %3479 = vmatprep.subr.mxu1 %v5530_v52 }
 0x19b   : > { %3467 = vmatpush3.msra.mxu0 %v4551_v33  ;;  %3480 = vmatpush3.msra.mxu1 %v1305_v0  ;;  %v1354_v9 = vand.u32 4294901760, %v1353_v42  ;;  %v1777_v42 = vld [vmem:[#allocation2] sm:$0xff] }
 0x19c   : > { %3468 = vmatprep.subr.mxu0 %v5530_v52  ;;  %3481 = vmatprep.subr.mxu1 %v5530_v52 }
 0x19d   : > { %3469 = vmatpush3.msra.mxu0 %v4566_v7  ;;  %3482 = vmatpush3.msra.mxu1 %v1312_v18 }
 0x19e   : > { %3470 = vmatprep.subr.mxu0 %v5530_v52  ;;  %3483 = vmatprep.subr.mxu1 %v5530_v52 }
 0x19f   : > { %3471 = vmatpush3.msra.mxu0 %v4581_v46  ;;  %3484 = vmatpush3.msra.mxu1 %v1319_v17 }
 0x1a0   : > { %3472 = vmatprep.subr.mxu0 %v5530_v52  ;;  %3485 = vmatprep.subr.mxu1 %v5530_v52 }
 0x1a1   : > { %3473 = vmatpush3.msra.mxu0 %v4594_v1  ;;  %3486 = vmatpush3.msra.mxu1 %v1326_v28 }
 0x1a2   : > { %3474 = vmatprep.mubr.msk.f32.mxu0 %vm3881_vm10, %v5530_v52  ;;  %3487 = vmatprep.subr.mxu1 %v5530_v52 }
 0x1a3   : > { %3498 = vmatprep.subr.mxu0 %v5530_v52  ;;  %3475 = vmatmul.mubr.f32.vlgmr.msra.gmra.mxu0 %v4394_v6  ;;  %v4745_v6 = vld [vmem:[#allocation2 + $0x20] sm:$0xff] }
 0x1a4   : > { %3488 = vmatpush3.msra.mxu1 %v1333_v41  ;;  %3499 = vmatpush3.msra.mxu0 %v4507_v11 }
 0x1a5   : > { %3489 = vmatprep.subr.mxu1 %v5530_v52  ;;  %3500 = vmatprep.subr.mxu0 %v5530_v52 }
 0x1a6   : > { %3490 = vmatpush3.msra.mxu1 %v1340_v38  ;;  %3501 = vmatpush3.msra.mxu0 %v4525_v43 }
 0x1a7   : > { %3491 = vmatprep.subr.mxu1 %v5530_v52  ;;  %3502 = vmatprep.subr.mxu0 %v5530_v52 }
 0x1a8   : > { %3492 = vmatpush3.msra.mxu1 %v1347_v12  ;;  %3503 = vmatpush3.msra.mxu0 %v4537_v30 }
 0x1a9   : > { %3493 = vmatprep.subr.mxu1 %v5530_v52  ;;  %3504 = vmatprep.subr.mxu0 %v5530_v52 }
 0x1aa   : > { %3494 = vmatpush3.msra.mxu1 %v1354_v9  ;;  %3495 = vmatprep.mubr.msk.f32.mxu1 %vm3881_vm10, %v5530_v52 }
 0x1ab   : > { %3505 = vmatpush3.msra.mxu0 %v4549_v32  ;;  %3496 = vmatmul.mubr.f32.vlgmr.msra.gmra.mxu1 %v4308_v31 }
 0x1ac   : > { %3506 = vmatprep.subr.mxu0 %v5530_v52  ;;  %3519 = vmatprep.subr.mxu1 %v5530_v52 }
 0x1ad   : > { %3507 = vmatpush3.msra.mxu0 %v4564_v61  ;;  %3520 = vmatpush3.msra.mxu1 %v4486_v55 }
 0x1ae   : > { %3508 = vmatprep.subr.mxu0 %v5530_v52  ;;  %3521 = vmatprep.subr.mxu1 %v5530_v52 }
 0x1af   : > { %3509 = vmatpush3.msra.mxu0 %v4579_v26  ;;  %3522 = vmatpush3.msra.mxu1 %v4501_v44 }
 0x1b0   : > { %3510 = vmatprep.subr.mxu0 %v5530_v52  ;;  %3523 = vmatprep.subr.mxu1 %v5530_v52 }
 0x1b1   : > { %3511 = vmatpush3.msra.mxu0 %v4592_v54  ;;  %3524 = vmatpush3.msra.mxu1 %v4514_v13 }
 0x1b2   : > { %3512 = vmatprep.subr.mxu0 %v5530_v52  ;;  %3525 = vmatprep.subr.mxu1 %v5530_v52 }
 0x1b3   : > { %3513 = vmatpush3.msra.mxu0 %v4605_v8  ;;  %3526 = vmatpush3.msra.mxu1 %v4527_v47 }
 0x1b4   : > { %3514 = vmatprep.subr.mxu0 %v5530_v52  ;;  %3527 = vmatprep.subr.mxu1 %v5530_v52 }
 0x1b5   : > { %3515 = vmatpush3.msra.mxu0 %v4615_v53  ;;  %3516 = vmatprep.mubr.msk.f32.mxu0 %vm3881_vm10, %v5530_v52 }
 0x1b6   : > { %3528 = vmatpush3.msra.mxu1 %v4539_v49  ;;  %3517 = vmatmul.mubr.f32.vlgmr.msra.gmra.mxu0 %v4329_v57 }
 0x1b7   : > { %3529 = vmatprep.subr.mxu1 %v5530_v52  ;;  %3540 = vmatprep.subr.mxu0 %v5530_v52 }
 0x1b8   : > { %3530 = vmatpush3.msra.mxu1 %v4551_v33  ;;  %3541 = vmatpush3.msra.mxu0 %v1296_v25 }
 0x1b9   : > { %3531 = vmatprep.subr.mxu1 %v5530_v52  ;;  %3542 = vmatprep.subr.mxu0 %v5530_v52 }
 0x1ba   : > { %3532 = vmatpush3.msra.mxu1 %v4566_v7  ;;  %3543 = vmatpush3.msra.mxu0 %v1303_v21 }
 0x1bb   : > { %3533 = vmatprep.subr.mxu1 %v5530_v52  ;;  %3544 = vmatprep.subr.mxu0 %v5530_v52 }
 0x1bc   : > { %3534 = vmatpush3.msra.mxu1 %v4581_v46  ;;  %3545 = vmatpush3.msra.mxu0 %v1310_v58 }
 0x1bd   : > { %3535 = vmatprep.subr.mxu1 %v5530_v52  ;;  %3546 = vmatprep.subr.mxu0 %v5530_v52 }
 0x1be   : > { %3536 = vmatpush3.msra.mxu1 %v4594_v1  ;;  %3537 = vmatprep.mubr.msk.f32.mxu1 %vm3881_vm10, %v5530_v52 }
 0x1bf   : > { %3547 = vmatpush3.msra.mxu0 %v1317_v45  ;;  %3538 = vmatmul.mubr.f32.vlgmr.msra.gmra.mxu1 %v4347_v39  ;;  %v389_v39 = vpop.permute.xlu1 %388 }
 0x1c0   : > { %3548 = vmatprep.subr.mxu0 %v5530_v52  ;;  %3561 = vmatprep.subr.mxu1 %v5530_v52 }
 0x1c1   : > { %3549 = vmatpush3.msra.mxu0 %v1324_v29  ;;  %3562 = vmatpush3.msra.mxu1 %v4486_v55 }
 0x1c2   : > { %3550 = vmatprep.subr.mxu0 %v5530_v52  ;;  %3563 = vmatprep.subr.mxu1 %v5530_v52 }
 0x1c3   : > { %3551 = vmatpush3.msra.mxu0 %v1331_v59  ;;  %3564 = vmatpush3.msra.mxu1 %v4501_v44  ;;  %v1749_v44 = vlaneseq }
 0x1c4   : > { %3552 = vmatprep.subr.mxu0 %v5530_v52  ;;  %3565 = vmatprep.subr.mxu1 %v5530_v52 }
 0x1c5   : > { %3553 = vmatpush3.msra.mxu0 %v1338_v36  ;;  %3566 = vmatpush3.msra.mxu1 %v4514_v13  ;;  %v1750_v34 = vshrl.u32 %v1749_v44, 7 }
 0x1c6   : > { %3554 = vmatprep.subr.mxu0 %v5530_v52  ;;  %3567 = vmatprep.subr.mxu1 %v5530_v52 }
 0x1c7   : > { %3555 = vmatpush3.msra.mxu0 %v1345_v10  ;;  %3568 = vmatpush3.msra.mxu1 %v4527_v47  ;;  %v1751_v30 = vsub.s32 0, %v1750_v34  ;;  %v1755_v32 = vsub.s32 1, %v1750_v34  ;;  %v1759_v24 = vsub.s32 2, %v1750_v34 }
 0x1c8   : > { %3556 = vmatprep.subr.mxu0 %v5530_v52  ;;  %3569 = vmatprep.subr.mxu1 %v5530_v52 }
 0x1c9   : > { %3557 = vmatpush3.msra.mxu0 %v1352_v27  ;;  %3558 = vmatprep.mubr.msk.f32.mxu0 %vm3881_vm10, %v5530_v52  ;;  %v1752_v22 = vrot.slane %v274_v2, %v1751_v30  ;;  %v1756_v48 = vrot.slane %v274_v2, %v1755_v32  ;;  %v1760_v27 = vrot.slane %v274_v2, %v1759_v24 }
 0x1ca   : > { %3570 = vmatpush3.msra.mxu1 %v4539_v49  ;;  %3559 = vmatmul.mubr.f32.vlgmr.msra.gmra.mxu0 %v4308_v31 }
 0x1cb   : > { %3571 = vmatprep.subr.mxu1 %v5530_v52  ;;  %3579 = vmatprep.mubr.msk.f32.mxu1 %vm3881_vm10, %v5530_v52 }
 0x1cc   : > { %3572 = vmatpush3.msra.mxu1 %v4551_v33  ;;  %2089 = vmatprep.mubr.f32.mxu0 %v5530_v52 }
 0x1cd   : > { %3573 = vmatprep.subr.mxu1 %v5530_v52  ;;  %1804 = vrot.lane.b32.xlu0 %v4745_v6, %s3875_s12 }
 0x1ce   : > { %3574 = vmatpush3.msra.mxu1 %v4566_v7 }
 0x1cf   : > { %3575 = vmatprep.subr.mxu1 %v5530_v52 }
 0x1d0   : > { %3576 = vmatpush3.msra.mxu1 %v4581_v46 }
 0x1d1   : > { %3577 = vmatprep.subr.mxu1 %v5530_v52  ;;  %1793 = vrot.lane.b32.xlu0 %v4745_v6, %s3876_s10 }
 0x1d2   : > { %3578 = vmatpush3.msra.mxu1 %v4594_v1 }
 0x1d3   : > { %3580 = vmatmul.mubr.f32.vlgmr.msra.gmra.mxu1 %v4308_v31 }
 0x1d4   : > { %2255 = vmatprep.mubr.f32.mxu1 %v5530_v52 }
 0x228   : > { %v611_v57 = vpop.f32.mrf.mxu0 }
 0x229   : > { %v612_v14 = vadd.f32 %v611_v57, %v389_v39 }
 0x22a   : > { %v613_v55 = vpop.f32.mrf.mxu0 }
 0x22b   : > { %v614_v11 = vadd.f32 %v613_v55, %v389_v39 }
 0x230   : > { %v773_v15 = vpop.f32.mrf.mxu1 }
 0x231   : > { %v774_v13 = vadd.f32 %v773_v15, %v612_v14 }
 0x232   : > { %v775_v19 = vpop.f32.mrf.mxu1 }
 0x233   : > { %v776_v50 = vadd.f32 %v775_v19, %v614_v11 }
 0x23a   : > { %v882_v5 = vpop.f32.mrf.mxu0 }
 0x23b   : > { %v883_v43 = vadd.f32 %v882_v5, %v774_v13 }
 0x23c   : > { %v884_v31 = vpop.f32.mrf.mxu0 }
 0x23d   : > { %v885_v25 = vadd.f32 %v884_v31, %v776_v50 }
 0x23f   : > { %v1805_v38 = vpop.permute.xlu0 %1804 }
 0x243   : > { %v974_v23 = vpop.f32.mrf.mxu1  ;;  %v1794_v12 = vpop.permute.xlu0 %1793 }
 0x244   : > { %v975_v20 = vadd.f32 %v974_v23, %v883_v43 }
 0x245   : > { %v976_v47 = vpop.f32.mrf.mxu1 }
 0x246   : > { %v977_v3 = vadd.f32 %v976_v47, %v885_v25 }
 0x24e   : > { %v1100_v35 = vpop.f32.mrf.mxu0 }
 0x24f   : > { %v1101_v21 = vadd.f32 %v1100_v35, %v975_v20 }
 0x250   : > { %v1102_v49 = vpop.f32.mrf.mxu0 }
 0x251   : > { %v1103_v40 = vadd.f32 %v1102_v49, %v977_v3 }
 0x257   : > { %v1190_v33 = vpop.f32.mrf.mxu1 }
 0x258   : > { %v1191_v4 = vadd.f32 %v1190_v33, %v1101_v21 }
 0x259   : > { %v1192_v58 = vpop.f32.mrf.mxu1 }
 0x25a   : > { %v1745_v61 = vmax.f32 %v1191_v4, 0.0  ;;  %v1193_v7 = vadd.f32 %v1192_v58, %v1103_v40 }
 0x25c   : > { %v1764_v56 = vmul.f32 %v1752_v22, %v1745_v61  ;;  %v1746_v45 = vmax.f32 %v1193_v7, 0.0 }
 0x25e   : > { %v4754_v26 = vmul.f32 %v1756_v48, %v1746_v45  ;;  %1849 = vrot.lane.b32.xlu1 %v1764_v56, %s3871_s7  ;;  %1860 = vrot.lane.b32.xlu0 %v1764_v56, %s3870_s18 }
 0x262   : > { %1827 = vrot.lane.b32.xlu1 %v1764_v56, %s3873_s11  ;;  %1838 = vrot.lane.b32.xlu0 %v1764_v56, %s3872_s19 }
 0x263   : > { %v1275_v46 = vpop.f32.mrf.mxu0 }
 0x264   : > { %v1276_v8 = vadd.f32 %v1275_v46, %v389_v39 }
 0x265   : > { %v3476_v51 = vpop.f32.mrf.mxu0 }
 0x266   : > { %1806 = vrot.lane.b32.xlu1 %v1764_v56, %s3875_s12  ;;  %1815 = vrot.lane.b32.xlu0 %v1764_v56, %s3874_s13 }
 0x26a   : > { %1795 = vrot.lane.b32.xlu1 %v1764_v56, %s3876_s10  ;;  %1851 = vrot.lane.b32.xlu0 %v4754_v26, %s3871_s7 }
 0x26b   : > { %v1391_v60 = vpop.f32.mrf.mxu1 }
 0x26c   : > { %v1392_v63 = vadd.f32 %v1391_v60, %v1276_v8 }
 0x26d   : > { %v3497_v29 = vpop.f32.mrf.mxu1 }
 0x26e   : > { %1784 = vrot.lane.b32.xlu1 %v1764_v56, %s3877_s14  ;;  %1829 = vrot.lane.b32.xlu0 %v4754_v26, %s3873_s11 }
 0x272   : > { %1862 = vrot.lane.b32.xlu1 %v4754_v26, %s3870_s18  ;;  %1808 = vrot.lane.b32.xlu0 %v4754_v26, %s3875_s12 }
 0x276   : > { %v1481_v54 = vpop.f32.mrf.mxu0  ;;  %1840 = vrot.lane.b32.xlu1 %v4754_v26, %s3872_s19  ;;  %1797 = vrot.lane.b32.xlu0 %v4754_v26, %s3876_s10 }
 0x277   : > { %v1482_v53 = vadd.f32 %v1481_v54, %v1392_v63  ;;  %v1872_v63 = vld [vmem:[%s5503_s4] sm:$0xff] }
 0x278   : > { %v3518_v1 = vpop.f32.mrf.mxu0 }
 0x27a   : > { %1817 = vrot.lane.b32.xlu1 %v4754_v26, %s3874_s13 }
 0x27f   : > { %v1563_v62 = vpop.f32.mrf.mxu1 }
 0x280   : > { %v1564_v18 = vadd.f32 %v1563_v62, %v1482_v53 }
 0x281   : > { %v3539_v59 = vpop.f32.mrf.mxu1 }
 0x28a   : > { %v1661_v0 = vpop.f32.mrf.mxu0 }
 0x28b   : > { %v1662_v10 = vadd.f32 %v1661_v0, %v1564_v18 }
 0x28c   : > { %v3560_v36 = vpop.f32.mrf.mxu0 }
 0x293   : > { %v1741_v17 = vpop.f32.mrf.mxu1 }
 0x294   : > { %v1742_v16 = vadd.f32 %v1741_v17, %v1662_v10 }
 0x295   : > { %v3581_v28 = vpop.f32.mrf.mxu1 }
 0x296   : > { %v1747_v37 = vmax.f32 %v1742_v16, 0.0 }
 0x298   : > { %v4778_v41 = vmul.f32 %v1760_v27, %v1747_v37 }
 0x29a   : > { %1853 = vrot.lane.b32.xlu1 %v4778_v41, %s3871_s7  ;;  %1864 = vrot.lane.b32.xlu0 %v4778_v41, %s3870_s18 }
 0x29e   : > { %1831 = vrot.lane.b32.xlu1 %v4778_v41, %s3873_s11  ;;  %1842 = vrot.lane.b32.xlu0 %v4778_v41, %s3872_s19 }
 0x2a2   : > { %1810 = vrot.lane.b32.xlu1 %v4778_v41, %s3875_s12  ;;  %1819 = vrot.lane.b32.xlu0 %v4778_v41, %s3874_s13  ;;  %s3712_s13 = smul.u32 384, %s3939_s25  ;;  %s3257_s12 = sshll.u32 %s4015_s16, 4  ;;  %s3258_s12 = int_to_ptr.vmem [resolvable:$true] %s3257_s12 }
 0x2a3   : > { %s3802_s28 = scalar_lea.vmem %s3258_s12, 384 }
 0x2a4   : > { %p3803_p12 = scmp.ne.s32.totalorder %s3258_s12, %s3802_s28 }
 0x2a6   : > { %1799 = vrot.lane.b32.xlu1 %v4778_v41, %s3876_s10  ;;  %1786 = vrot.lane.b32.xlu0 %v4754_v26, %s3877_s14  ;;  %p3804_p0 = pnand %p3803_p12, %p5570_p13 }
 0x2a8   : > { %p3805_p1 = pneg %p3804_p0 }
 0x2aa   : > { %1788 = vrot.lane.b32.xlu1 %v4778_v41, %s3877_s14  ;;  %1782 = vrot.lane.b32.xlu0 %v4745_v6, %s3877_s14 }
 0x2ae   : > { %1866 = vrot.lane.b32.xlu1 %v1777_v42, %s3870_s18  ;;  %1855 = vrot.lane.b32.xlu0 %v1777_v42, %s3871_s7 }
 0x2b2   : > { %1844 = vrot.lane.b32.xlu1 %v1777_v42, %s3872_s19 }
 0x2b6   : > { %1833 = vrot.lane.b32.xlu1 %v1777_v42, %s3873_s11 }
 0x2ba   : > { %1880 = vrot.lane.b32.xlu1 %v1764_v56, %s3878_s17 }
 0x2d0   : > { %v1850_v9 = vpop.permute.xlu1 %1849  ;;  %v1861_v57 = vpop.permute.xlu0 %1860 }
 0x2d1   : > { %1942 = vrot.lane.b32.xlu0 %v1861_v57, %s3878_s17 }
 0x2d4   : > { %v1828_v39 = vpop.permute.xlu1 %1827  ;;  %v1839_v55 = vpop.permute.xlu0 %1838 }
 0x2d5   : > { %1926 = vrot.lane.b32.xlu1 %v1839_v55, %s3878_s17  ;;  %1934 = vrot.lane.b32.xlu0 %v1850_v9, %s3878_s17 }
 0x2d8   : > { %v1807_v15 = vpop.permute.xlu1 %1806  ;;  %v1816_v5 = vpop.permute.xlu0 %1815 }
 0x2d9   : > { %1918 = vrot.lane.b32.xlu0 %v1828_v39, %s3878_s17  ;;  %1910 = vrot.lane.b32.xlu1 %v1816_v5, %s3878_s17  ;;  %v1812_v14 = vsel %vm319_vm5, %v1805_v38, %v1807_v15 }
 0x2dc   : > { %v1796_v44 = vpop.permute.xlu1 %1795  ;;  %v1852_v19 = vpop.permute.xlu0 %1851 }
 0x2dd   : > { %v1801_v11 = vsel %vm307_vm6, %v1794_v12, %v1796_v44  ;;  %1902 = vrot.lane.b32.xlu0 %v1812_v14, %s3878_s17  ;;  %v1857_v54 = vsel %vm368_vm1, %v1850_v9, %v1852_v19 }
 0x2de   : > { %1894 = vrot.lane.b32.xlu1 %v1801_v11, %s3878_s17 }
 0x2e0   : > { %v1785_v31 = vpop.permute.xlu1 %1784  ;;  %v1830_v23 = vpop.permute.xlu0 %1829 }
 0x2e1   : > { %v1835_v59 = vsel %vm344_vm3, %v1828_v39, %v1830_v23 }
 0x2e4   : > { %v1863_v13 = vpop.permute.xlu1 %1862  ;;  %v1809_v34 = vpop.permute.xlu0 %1808 }
 0x2e5   : > { %v1868_v51 = vsel %vm380_vm0, %v1861_v57, %v1863_v13 }
 0x2e8   : > { %v1841_v35 = vpop.permute.xlu1 %1840  ;;  %v1798_v25 = vpop.permute.xlu0 %1797 }
 0x2e9   : > { %v1846_v50 = vsel %vm356_vm2, %v1839_v55, %v1841_v35  ;;  %v1802_v20 = vsel %vm307_vm6, %v1796_v44, %v1798_v25 }
 0x2ea   : > { %1928 = vrot.lane.b32.xlu1 %v1846_v50, %s3878_s17 }
 0x2ec   : > { %v1818_v43 = vpop.permute.xlu1 %1817 }
 0x2ed   : > { %v1821_v47 = vsel %vm329_vm4, %v1816_v5, %v1818_v43 }
 0x2ee   : > { %1912 = vrot.lane.b32.xlu1 %v1821_v47, %s3878_s17  ;;  %v1871_v47 = vld [vmem:[%s5502_s3] sm:$0xff] }
 0x2f2   : > { %1896 = vrot.lane.b32.xlu1 %v1802_v20, %s3878_s17 }
 0x30c   : > { %v1854_v30 = vpop.permute.xlu1 %1853  ;;  %v1865_v49 = vpop.permute.xlu0 %1864 }
 0x30d   : > { %v1869_v2 = vsel %vm380_vm0, %v1863_v13, %v1865_v49  ;;  %v1858_v32 = vsel %vm368_vm1, %v1852_v19, %v1854_v30 }
 0x30e   : > { %1946 = vrot.lane.b32.xlu1 %v1869_v2, %s3878_s17 }
 0x310   : > { %v1832_v3 = vpop.permute.xlu1 %1831  ;;  %v1843_v21 = vpop.permute.xlu0 %1842 }
 0x311   : > { %v1836_v4 = vsel %vm344_vm3, %v1830_v23, %v1832_v3  ;;  %v1847_v36 = vsel %vm356_vm2, %v1841_v35, %v1843_v21 }
 0x312   : > { %1938 = vrot.lane.b32.xlu1 %v1858_v32, %s3878_s17  ;;  %v2005_v32 = vsel %vm518_vm9, %v1871_v47, 0 }
 0x314   : > { %v1811_v33 = vpop.permute.xlu1 %1810  ;;  %v1820_v40 = vpop.permute.xlu0 %1819 }
 0x315   : > { %v1814_v61 = vsel %vm319_vm5, %v1809_v34, %v1811_v33  ;;  %v1822_v53 = vsel %vm329_vm4, %v1818_v43, %v1820_v40 }
 0x316   : > { %1922 = vrot.lane.b32.xlu1 %v1836_v4, %s3878_s17 }
 0x318   : > { %v1800_v22 = vpop.permute.xlu1 %1799  ;;  %v1787_v58 = vpop.permute.xlu0 %1786 }
 0x319   : > { %v1791_v0 = vsel %vm295_vm7, %v1785_v31, %v1787_v58  ;;  %v1803_v18 = vsel %vm307_vm6, %v1798_v25, %v1800_v22 }
 0x31a   : > { %1906 = vrot.lane.b32.xlu1 %v1814_v61, %s3878_s17 }
 0x31c   : > { %v1789_v7 = vpop.permute.xlu1 %1788  ;;  %v1783_v48 = vpop.permute.xlu0 %1782 }
 0x31d   : > { %v1792_v56 = vsel %vm295_vm7, %v1787_v58, %v1789_v7  ;;  %v1790_v45 = vsel %vm295_vm7, %v1783_v48, %v1785_v31 }
 0x31e   : > { %1890 = vrot.lane.b32.xlu1 %v1792_v56, %s3878_s17  ;;  %1886 = vrot.lane.b32.xlu0 %v1790_v45, %s3878_s17  ;;  %v4940_v45 = vand.u32 4294901760, %v2005_v32 }
 0x320   : > { %v1867_v46 = vpop.permute.xlu1 %1866  ;;  %v1856_v60 = vpop.permute.xlu0 %1855 }
 0x321   : > { %v1859_v1 = vsel %vm368_vm1, %v1854_v30, %v1856_v60  ;;  %v1870_v24 = vsel %vm380_vm0, %v1865_v49, %v1867_v46 }
 0x322   : > { %1878 = vrot.lane.b32.xlu1 %v4745_v6, %s3878_s17  ;;  %1944 = vrot.lane.b32.xlu0 %v1868_v51, %s3878_s17  ;;  %v1813_v6 = vsel %vm319_vm5, %v1807_v15, %v1809_v34 }
 0x324   : > { %v1845_v29 = vpop.permute.xlu1 %1844 }
 0x325   : > { %v1848_v10 = vsel %vm356_vm2, %v1843_v21, %v1845_v29 }
 0x326   : > { %1936 = vrot.lane.b32.xlu0 %v1857_v54, %s3878_s17  ;;  %1940 = vrot.lane.b32.xlu1 %v1859_v1, %s3878_s17 }
 0x328   : > { %v1834_v62 = vpop.permute.xlu1 %1833 }
 0x329   : > { %v1837_v8 = vsel %vm344_vm3, %v1832_v3, %v1834_v62 }
 0x32a   : > { %1920 = vrot.lane.b32.xlu0 %v1835_v59, %s3878_s17  ;;  %1924 = vrot.lane.b32.xlu1 %v1837_v8, %s3878_s17 }
 0x32c   : > { %v4869_v17 = vpop.permute.xlu1 %1880 }
 0x32e   : > { %1904 = vrot.lane.b32.xlu0 %v1813_v6, %s3878_s17  ;;  %1908 = vrot.lane.b32.xlu1 %v1811_v33, %s3878_s17 }
 0x332   : > { %1888 = vrot.lane.b32.xlu0 %v1791_v0, %s3878_s17  ;;  %1892 = vrot.lane.b32.xlu1 %v1789_v7, %s3878_s17 }
 0x336   : > { %1930 = vrot.lane.b32.xlu0 %v1847_v36, %s3878_s17  ;;  %1875 = vperm.xlu1 %3772, %v1872_v63  }
 0x33a   : > { %1914 = vrot.lane.b32.xlu0 %v1822_v53, %s3878_s17  ;;  %v4963_v53 = vsub.f32 %v2005_v32, %v4940_v45 }
 0x33e   : > { %1898 = vrot.lane.b32.xlu0 %v1803_v18, %s3878_s17 }
 0x342   : > { %1882 = vrot.lane.b32.xlu0 %v4754_v26, %s3878_s17 }
 0x343   : > { %v1943_v28 = vpop.permute.xlu0 %1942 }
 0x346   : > { %1948 = vrot.lane.b32.xlu0 %v1870_v24, %s3878_s17 }
 0x347   : > { %v1927_v16 = vpop.permute.xlu1 %1926  ;;  %v1935_v42 = vpop.permute.xlu0 %1934 }
 0x34a   : > { %1932 = vrot.lane.b32.xlu0 %v1848_v10, %s3878_s17 }
 0x34b   : > { %v1911_v27 = vpop.permute.xlu1 %1910  ;;  %v1919_v12 = vpop.permute.xlu0 %1918 }
 0x34e   : > { %1916 = vrot.lane.b32.xlu0 %v1820_v40, %s3878_s17 }
 0x34f   : > { %v1903_v39 = vpop.permute.xlu0 %1902 }
 0x350   : > { %v4871_v26 = vpop.permute.xlu1 %1894 }
 0x352   : > { %1900 = vrot.lane.b32.xlu0 %v1800_v22, %s3878_s17 }
 0x356   : > { %1884 = vrot.lane.b32.xlu0 %v4778_v41, %s3878_s17  ;;  %s3255_s17 = scalar_lea.hbm %s5505_s6, %s3712_s13 }
 0x35c   : > { %v4873_v37 = vpop.permute.xlu1 %1928 }
 0x35d   : > { %v1968_v33 = vsel %vm463_vm8, %v1927_v16, %v4873_v37 }
 0x35e   : > { %v4942_v46 = vand.u32 4294901760, %v1968_v33 }
 0x360   : > { %v4875_v38 = vpop.permute.xlu1 %1912  ;;  %v4959_v63 = vsub.f32 %v1968_v33, %v4942_v46 }
 0x361   : > { %v1962_v1 = vsel %vm463_vm8, %v1911_v27, %v4875_v38 }
 0x362   : > { %v4965_v18 = vand.u32 4294901760, %v1962_v1 }
 0x364   : > { %v4877_v9 = vpop.permute.xlu1 %1896 }
 0x365   : > { %v1956_v10 = vsel %vm463_vm8, %v4871_v26, %v4877_v9  ;;  %v5520_v26 = vand.u32 4294901760, %v4959_v63 }
 0x380   : > { %v4879_v57 = vpop.permute.xlu1 %1946 }
 0x384   : > { %v4883_v41 = vpop.permute.xlu1 %1938 }
 0x388   : > { %v4892_v11 = vpop.permute.xlu1 %1922 }
 0x38c   : > { %v4921_v3 = vpop.permute.xlu1 %1906 }
 0x390   : > { %v4881_v55 = vpop.permute.xlu0 %1886  ;;  %v4945_v60 = vpop.permute.xlu1 %1890 }
 0x394   : > { %v1945_v15 = vpop.permute.xlu0 %1944 }
 0x395   : > { %v1974_v5 = vsel %vm463_vm8, %v1943_v28, %v1945_v15  ;;  %v1975_v14 = vsel %vm463_vm8, %v1945_v15, %v4879_v57  ;;  %v1879_v28 = vpop.permute.xlu1 %1878 }
 0x396   : > { %v4888_v44 = vand.u32 4294901760, %v1975_v14  ;;  %v4890_v19 = vand.u32 4294901760, %v1974_v5 }
 0x398   : > { %v4895_v31 = vsub.f32 %v1975_v14, %v4888_v44  ;;  %v4898_v23 = vsub.f32 %v1974_v5, %v4890_v19  ;;  %2022 = vmatprep.subr.mxu0 %v4888_v44  ;;  %v1937_v13 = vpop.permute.xlu0 %1936 }
 0x399   : > { %v1971_v34 = vsel %vm463_vm8, %v1935_v42, %v1937_v13  ;;  %v1972_v35 = vsel %vm463_vm8, %v1937_v13, %v4883_v41  ;;  %2024 = vmatpush1.msra.mxu0 %v4890_v19  ;;  %v4993_v13 = vand.u32 4294901760, %v4963_v53 }
 0x39a   : > { %v5525_v50 = vand.u32 4294901760, %v4898_v23  ;;  %v4906_v43 = vand.u32 4294901760, %v1972_v35  ;;  %v4911_v25 = vand.u32 4294901760, %v1971_v34  ;;  %v5528_v20 = vand.u32 4294901760, %v4895_v31 }
 0x39c   : > { %v2124_v30 = vsub.f32 %v4898_v23, %v5525_v50  ;;  %v4918_v49 = vsub.f32 %v1972_v35, %v4906_v43  ;;  %2026 = vmatprep.subr.mxu0 %v4906_v43  ;;  %v1921_v2 = vpop.permute.xlu0 %1920  ;;  %v4924_v21 = vsub.f32 %v1971_v34, %v4911_v25  ;;  %v2118_v4 = vsub.f32 %v4895_v31, %v5528_v20 }
 0x39d   : > { %2028 = vmatpush1.msra.mxu0 %v4911_v25  ;;  %v1966_v58 = vsel %vm463_vm8, %v1921_v2, %v4892_v11  ;;  %v1965_v51 = vsel %vm463_vm8, %v1919_v12, %v1921_v2  ;;  %v4996_v34 = vsub.f32 %v1962_v1, %v4965_v18  ;;  %v4998_v35 = vand.u32 4294901760, %v1956_v10 }
 0x39e   : > { %v5522_v40 = vand.u32 4294901760, %v4924_v21  ;;  %v5524_v22 = vand.u32 4294901760, %v4918_v49  ;;  %v2125_v7 = vand.u32 4294901760, %v2124_v30  ;;  %v2119_v56 = vand.u32 4294901760, %v2118_v4 }
 0x39f   : > { %v4947_v29 = vand.u32 4294901760, %v1966_v58  ;;  %v4954_v8 = vand.u32 4294901760, %v1965_v51  ;;  %v5035_v1 = vsub.f32 %v1956_v10, %v4998_v35 }
 0x3a0   : > { %v1905_v61 = vpop.permute.xlu0 %1904  ;;  %v2136_v48 = vsub.f32 %v4924_v21, %v5522_v40  ;;  %2120 = vmatprep.subr.mxu1 %v2119_v56  ;;  %v2130_v54 = vsub.f32 %v4918_v49, %v5524_v22 }
 0x3a1   : > { %2126 = vmatpush1.msra.mxu1 %v2125_v7  ;;  %v1960_v6 = vsel %vm463_vm8, %v1905_v61, %v4921_v3  ;;  %v1959_v36 = vsel %vm463_vm8, %v1903_v39, %v1905_v61  ;;  %v4968_v24 = vsub.f32 %v1966_v58, %v4947_v29  ;;  %v4978_v42 = vsub.f32 %v1965_v51, %v4954_v8 }
 0x3a2   : > { %v2137_v59 = vand.u32 4294901760, %v2136_v48  ;;  %v2131_v0 = vand.u32 4294901760, %v2130_v54  ;;  %v4973_v16 = vand.u32 4294901760, %v1960_v6  ;;  %v4980_v12 = vand.u32 4294901760, %v1959_v36 }
 0x3a3   : > { %v5519_v47 = vand.u32 4294901760, %v4968_v24  ;;  %v5523_v33 = vand.u32 4294901760, %v4978_v42  ;;  %v2148_v7 = vsub.f32 %v4959_v63, %v5520_v26  ;;  %v2093_v51 = vsub.f32 %v4963_v53, %v4993_v13 }
 0x3a4   : > { %v1889_v62 = vpop.permute.xlu0 %1888  ;;  %2132 = vmatprep.subr.mxu1 %v2131_v0  ;;  %v5004_v30 = vsub.f32 %v1960_v6, %v4973_v16  ;;  %v5016_v4 = vsub.f32 %v1959_v36, %v4980_v12  ;;  %v5526_v54 = vand.u32 4294901760, %v4996_v34 }
 0x3a5   : > { %2138 = vmatpush1.msra.mxu1 %v2137_v59  ;;  %v1954_v39 = vsel %vm463_vm8, %v1889_v62, %v4945_v60  ;;  %v1953_v5 = vsel %vm463_vm8, %v4881_v55, %v1889_v62  ;;  %v2154_v62 = vsub.f32 %v4968_v24, %v5519_v47  ;;  %v5103_v52 = vand.u32 4294901760, %v2093_v51 }
 0x3a6   : > { %v5006_v2 = vand.u32 4294901760, %v1954_v39  ;;  %v5018_v58 = vand.u32 4294901760, %v1953_v5  ;;  %v5529_v10 = vand.u32 4294901760, %v5004_v30 }
 0x3a8   : > { %v4975_v27 = vpop.permute.xlu0 %1930  ;;  %v5044_v59 = vsub.f32 %v1954_v39, %v5006_v2  ;;  %v5532_v39 = vand.u32 4294901760, %v5016_v4 }
 0x3a9   : > { %v1969_v15 = vsel %vm463_vm8, %v4873_v37, %v4975_v27  ;;  %v1950_v37 = vsel %vm463_vm8, %v1879_v28, %v4869_v17  ;;  %v2160_v28 = vsub.f32 %v4978_v42, %v5523_v33  ;;  %v2172_v33 = vsub.f32 %v4996_v34, %v5526_v54 }
 0x3aa   : > { %v4990_v14 = vand.u32 4294901760, %v1969_v15  ;;  %v5534_v54 = vand.u32 4294901760, %v5044_v59 }
 0x3ac   : > { %v5009_v55 = vsub.f32 %v1969_v15, %v4990_v14  ;;  %2030 = vmatprep.subr.mxu0 %v4990_v14  ;;  %v5012_v32 = vpop.permute.xlu0 %1914  ;;  %v5061_v15 = vsub.f32 %v1953_v5, %v5018_v58  ;;  %v5533_v5 = vand.u32 4294901760, %v5035_v1 }
 0x3ad   : > { %v1963_v61 = vsel %vm463_vm8, %v4875_v38, %v5012_v32  ;;  %2032 = vmatpush1.msra.mxu0 %v4942_v46  ;;  %v5037_v38 = vand.u32 4294901760, %v1950_v37 }
 0x3ae   : > { %v5027_v48 = vand.u32 4294901760, %v1963_v61  ;;  %2034 = vmatprep.subr.mxu0 %v4947_v29  ;;  %v5521_v56 = vand.u32 4294901760, %v5009_v55 }
 0x3af   : > { %2036 = vmatpush1.msra.mxu0 %v4954_v8  ;;  %v5076_v22 = vsub.f32 %v1950_v37, %v5037_v38  ;;  %v2178_v37 = vsub.f32 %v5004_v30, %v5529_v10 }
 0x3b0   : > { %v5047_v6 = vsub.f32 %v1963_v61, %v5027_v48  ;;  %2038 = vmatprep.subr.mxu0 %v5027_v48  ;;  %v5050_v0 = vpop.permute.xlu0 %1898  ;;  %v2142_v36 = vsub.f32 %v5009_v55, %v5521_v56  ;;  %v2149_v56 = vand.u32 4294901760, %v2148_v7 }
 0x3b1   : > { %v1957_v61 = vsel %vm463_vm8, %v4877_v9, %v5050_v0  ;;  %2040 = vmatpush1.msra.mxu0 %v4965_v18  ;;  %v2155_v9 = vand.u32 4294901760, %v2154_v62  ;;  %v2184_v62 = vsub.f32 %v5016_v4, %v5532_v39  ;;  %v2179_v51 = vand.u32 4294901760, %v2178_v37 }
 0x3b2   : > { %v5067_v47 = vand.u32 4294901760, %v1957_v61  ;;  %2042 = vmatprep.subr.mxu0 %v4973_v16  ;;  %v2143_v26 = vand.u32 4294901760, %v2142_v36  ;;  %v5527_v40 = vand.u32 4294901760, %v5047_v6 }
 0x3b3   : > { %2044 = vmatpush1.msra.mxu0 %v4980_v12 }
 0x3b4   : > { %v5080_v50 = vsub.f32 %v1957_v61, %v5067_v47  ;;  %2046 = vmatprep.subr.mxu0 %v5067_v47  ;;  %2144 = vmatprep.subr.mxu1 %v2143_v26  ;;  %v5083_v7 = vpop.permute.xlu0 %1882  ;;  %v2166_v36 = vsub.f32 %v5047_v6, %v5527_v40  ;;  %v2161_v40 = vand.u32 4294901760, %v2160_v28  ;;  %v2196_v61 = vsub.f32 %v5035_v1, %v5533_v5 }
 0x3b5   : > { %v1951_v26 = vsel %vm463_vm8, %v4869_v17, %v5083_v7  ;;  %2048 = vmatpush1.msra.mxu0 %v4998_v35  ;;  %2150 = vmatpush1.msra.mxu1 %v2149_v56  ;;  %v2219_v17 = vand.u32 4294901760, %v5076_v22  ;;  %v2173_v56 = vand.u32 4294901760, %v2172_v33  ;;  %v5553_v5 = vand.u32 4294901760, %v5061_v15 }
 0x3b6   : > { %v5100_v20 = vand.u32 4294901760, %v1951_v26  ;;  %2050 = vmatprep.subr.mxu0 %v5006_v2  ;;  %2156 = vmatprep.subr.mxu1 %v2155_v9  ;;  %v2167_v10 = vand.u32 4294901760, %v2166_v36  ;;  %v2189_v39 = vand.u32 4294901760, %v5080_v50  ;;  %v2202_v36 = vsub.f32 %v5044_v59, %v5534_v54 }
 0x3b7   : > { %2052 = vmatpush1.msra.mxu0 %v5018_v58  ;;  %2162 = vmatpush1.msra.mxu1 %v2161_v40  ;;  %v2208_v40 = vsub.f32 %v5061_v15, %v5553_v5  ;;  %v2185_v33 = vand.u32 4294901760, %v2184_v62  ;;  %v2197_v54 = vand.u32 4294901760, %v2196_v61 }
 0x3b8   : > { %v5112_v28 = vsub.f32 %v1951_v26, %v5100_v20  ;;  %2054 = vmatprep.subr.mxu0 %v5100_v20  ;;  %2168 = vmatprep.subr.mxu1 %v2167_v10  ;;  %v2190_v9 = vsub.f32 %v5080_v50, %v2189_v39  ;;  %v2220_v26 = vsub.f32 %v5076_v22, %v2219_v17  ;;  %v2203_v5 = vand.u32 4294901760, %v2202_v36 }
 0x3b9   : > { %2056 = vmatpush1.msra.mxu0 %v5037_v38  ;;  %2174 = vmatpush1.msra.mxu1 %v2173_v56  ;;  %v2209_v56 = vand.u32 4294901760, %v2208_v40  ;;  %v5555_v36 = vand.u32 4294901760, %v4895_v31  ;;  %v5556_v40 = vand.u32 4294901760, %v4898_v23 }
 0x3ba   : > { %2095 = vmatmul.mubr.f32.vlgmr.msra.gmra.mxu0 %v5103_v52  ;;  %2180 = vmatprep.subr.mxu1 %v2179_v51  ;;  %v2191_v10 = vand.u32 4294901760, %v2190_v9  ;;  %v2213_v37 = vand.u32 4294901760, %v5112_v28  ;;  %v2221_v61 = vand.u32 4294901760, %v2220_v26  ;;  %v1949_v9 = vpop.permute.xlu0 %1948  ;;  %v5558_v26 = vand.u32 4294901760, %v4924_v21 }
 0x3bb   : > { %2279 = vmatprep.subr.mxu0 %v4895_v31  ;;  %2186 = vmatpush1.msra.mxu1 %v2185_v33  ;;  %v5557_v33 = vand.u32 4294901760, %v4918_v49  ;;  %v5559_v31 = vand.u32 4294901760, %v5009_v55 }
 0x3bc   : > { %2282 = vmatpush1.msra.mxu0 %v4898_v23  ;;  %2192 = vmatprep.subr.mxu1 %v2191_v10  ;;  %v2214_v62 = vsub.f32 %v5112_v28, %v2213_v37  ;;  %v1941_v10 = vpop.permute.xlu1 %1940  ;;  %v5560_v23 = vand.u32 4294901760, %v4959_v63 }
 0x3bd   : > { %2285 = vmatprep.subr.mxu0 %v4918_v49  ;;  %2198 = vmatpush1.msra.mxu1 %v2197_v54  ;;  %v5554_v54 = vmov 0.0   ;;  %v5561_v49 = vand.u32 4294901760, %v4968_v24 }
 0x3be   : > { %2288 = vmatpush1.msra.mxu0 %v4924_v21  ;;  %2204 = vmatprep.subr.mxu1 %v2203_v5  ;;  %v2215_v51 = vand.u32 4294901760, %v2214_v62  ;;  %v1933_v5 = vpop.permute.xlu0 %1932  ;;  %v5562_v21 = vand.u32 4294901760, %v4978_v42  ;;  %v1976_v62 = vsel %vm463_vm8, %v4879_v57, %v1949_v9 }
 0x3bf   : > { %2291 = vmatprep.subr.mxu0 %v5009_v55  ;;  %2210 = vmatpush1.msra.mxu1 %v2209_v56  ;;  %v5203_v57 = vand.u32 4294901760, %v1976_v62 }
 0x3c0   : > { %2294 = vmatpush1.msra.mxu0 %v4959_v63  ;;  %2216 = vmatprep.subr.mxu1 %v2215_v51  ;;  %v1925_v55 = vpop.permute.xlu1 %1924  ;;  %v5563_v63 = vand.u32 4294901760, %v5047_v6  ;;  %v5565_v51 = vand.u32 4294901760, %v5004_v30 }
 0x3c1   : > { %2297 = vmatprep.subr.mxu0 %v4968_v24  ;;  %2222 = vmatpush1.msra.mxu1 %v2221_v61  ;;  %v5564_v24 = vand.u32 4294901760, %v4996_v34 }
 0x3c2   : > { %2300 = vmatpush1.msra.mxu0 %v4978_v42  ;;  %2257 = vmatmul.mubr.f32.vlgmr.msra.gmra.mxu1 %v4940_v45  ;;  %v1973_v42 = vsel %vm463_vm8, %v4883_v41, %v1941_v10  ;;  %v1917_v56 = vpop.permute.xlu0 %1916 }
 0x3c3   : > { %2303 = vmatprep.subr.mxu0 %v5047_v6  ;;  %2387 = vmatprep.subr.mxu1 %v4888_v44  ;;  %v5566_v6 = vand.u32 4294901760, %v5016_v4  ;;  %v5213_v41 = vand.u32 4294901760, %v1973_v42 }
 0x3c4   : > { %2306 = vmatpush1.msra.mxu0 %v4996_v34  ;;  %2389 = vmatpush1.msra.mxu1 %v4890_v19  ;;  %v1909_v34 = vpop.permute.xlu1 %1908 }
 0x3c5   : > { %2309 = vmatprep.subr.mxu0 %v5004_v30  ;;  %2391 = vmatprep.subr.mxu1 %v4906_v43  ;;  %v1964_v30 = vsel %vm463_vm8, %v5012_v32, %v1917_v56 }
 0x3c6   : > { %2312 = vmatpush1.msra.mxu0 %v5016_v4  ;;  %2393 = vmatpush1.msra.mxu1 %v4911_v25  ;;  %v5254_v32 = vand.u32 4294901760, %v1964_v30 }
 0x3c7   : > { %2315 = vmatprep.subr.mxu0 %v5080_v50  ;;  %2395 = vmatprep.subr.mxu1 %v4990_v14  ;;  %v5224_v50 = vsub.f32 %v1976_v62, %v5203_v57 }
 0x3c8   : > { %2318 = vmatpush1.msra.mxu0 %v5035_v1  ;;  %2397 = vmatpush1.msra.mxu1 %v4942_v46 }
 0x3c9   : > { %2321 = vmatprep.subr.mxu0 %v5044_v59  ;;  %2399 = vmatprep.subr.mxu1 %v4947_v29  ;;  %v2781_v4 = vand.u32 4294901760, %v5224_v50 }
 0x3ca   : > { %2324 = vmatpush1.msra.mxu0 %v5061_v15  ;;  %2401 = vmatpush1.msra.mxu1 %v4954_v8 }
 0x3cb   : > { %2327 = vmatprep.subr.mxu0 %v5112_v28  ;;  %2403 = vmatprep.subr.mxu1 %v5027_v48 }
 0x3cc   : > { %2330 = vmatpush1.msra.mxu0 %v5076_v22  ;;  %2363 = vmatprep.mubr.f32.mxu0 %v5554_v54  ;;  %v1893_v22 = vpop.permute.xlu1 %1892 }
 0x3cd   : > { %2405 = vmatpush1.msra.mxu1 %v4965_v18  ;;  %2366 = vmatmul.mubr.f32.vlgmr.msra.gmra.mxu0 %v4963_v53 }
 0x3ce   : > { %2407 = vmatprep.subr.mxu1 %v4973_v16  ;;  %2481 = vmatprep.subr.mxu0 %v5555_v36 }
 0x3cf   : > { %2409 = vmatpush1.msra.mxu1 %v4980_v12  ;;  %2485 = vmatpush1.msra.mxu0 %v5556_v40 }
 0x3d0   : > { %2411 = vmatprep.subr.mxu1 %v5067_v47  ;;  %2489 = vmatprep.subr.mxu0 %v5557_v33 }
 0x3d1   : > { %2413 = vmatpush1.msra.mxu1 %v4998_v35  ;;  %2493 = vmatpush1.msra.mxu0 %v5558_v26 }
 0x3d2   : > { %2415 = vmatprep.subr.mxu1 %v5006_v2  ;;  %2497 = vmatprep.subr.mxu0 %v5559_v31 }
 0x3d3   : > { %2417 = vmatpush1.msra.mxu1 %v5018_v58  ;;  %2501 = vmatpush1.msra.mxu0 %v5560_v23 }
 0x3d4   : > { %2419 = vmatprep.subr.mxu1 %v5100_v20  ;;  %2505 = vmatprep.subr.mxu0 %v5561_v49 }
 0x3d5   : > { %2421 = vmatpush1.msra.mxu1 %v5037_v38  ;;  %2454 = vmatprep.mubr.f32.mxu1 %v5554_v54 }
 0x3d6   : > { %2509 = vmatpush1.msra.mxu0 %v5562_v21  ;;  %2458 = vmatmul.mubr.f32.vlgmr.msra.gmra.mxu1 %v4993_v13 }
 0x3d7   : > { %2513 = vmatprep.subr.mxu0 %v5563_v63  ;;  %2605 = vmatprep.subr.mxu1 %v4888_v44  ;;  %v1970_v44 = vsel %vm463_vm8, %v4975_v27, %v1933_v5 }
 0x3d8   : > { %2517 = vmatpush1.msra.mxu0 %v5564_v24  ;;  %2607 = vmatpush1.msra.mxu1 %v4890_v19  ;;  %v5567_v19 = vand.u32 4294901760, %v5035_v1  ;;  %v5226_v27 = vand.u32 4294901760, %v1970_v44 }
 0x3d9   : > { %2521 = vmatprep.subr.mxu0 %v5565_v51  ;;  %2609 = vmatprep.subr.mxu1 %v4906_v43  ;;  %v1967_v43 = vsel %vm463_vm8, %v4892_v11, %v1925_v55  ;;  %v5235_v11 = vsub.f32 %v1973_v42, %v5213_v41 }
 0x3da   : > { %2525 = vmatpush1.msra.mxu0 %v5566_v6  ;;  %2611 = vmatpush1.msra.mxu1 %v4911_v25  ;;  %v5568_v25 = vand.u32 4294901760, %v5044_v59 }
 0x3db   : > { %2529 = vmatprep.subr.mxu0 %v2189_v39  ;;  %2613 = vmatprep.subr.mxu1 %v4990_v14  ;;  %v5569_v14 = vand.u32 4294901760, %v5061_v15  ;;  %v2782_v39 = vsub.f32 %v5224_v50, %v2781_v4 }
 0x3dc   : > { %2533 = vmatpush1.msra.mxu0 %v5567_v19  ;;  %2615 = vmatpush1.msra.mxu1 %v4942_v46  ;;  %v1901_v46 = vpop.permute.xlu0 %1900 }
 0x3dd   : > { %2537 = vmatprep.subr.mxu0 %v5568_v25  ;;  %2617 = vmatprep.subr.mxu1 %v4947_v29  ;;  %v5237_v29 = vand.u32 4294901760, %v1967_v43  ;;  %v1958_v1 = vsel %vm463_vm8, %v5050_v0, %v1901_v46 }
 0x3de   : > { %2541 = vmatpush1.msra.mxu0 %v5569_v14  ;;  %2619 = vmatpush1.msra.mxu1 %v4954_v8  ;;  %v1961_v8 = vsel %vm463_vm8, %v4921_v3, %v1909_v34  ;;  %v5281_v15 = vand.u32 4294901760, %v1958_v1 }
 0x3df   : > { %2545 = vmatprep.subr.mxu0 %v2213_v37  ;;  %2621 = vmatprep.subr.mxu1 %v5027_v48  ;;  %v5250_v48 = vsub.f32 %v1970_v44, %v5226_v27  ;;  %v5260_v3 = vsub.f32 %v1967_v43, %v5237_v29  ;;  %v1876_v44 = vpop.permute.xlu1 %1875 }
 0x3e0   : > { %2549 = vmatpush1.msra.mxu0 %v2219_v17  ;;  %2582 = vmatprep.mubr.f32.mxu0 %v5554_v54  ;;  %v1885_v59 = vpop.permute.xlu0 %1884  ;;  %v5307_v37 = vsub.f32 %v1958_v1, %v5281_v15 }
 0x3e1   : > { %2623 = vmatpush1.msra.mxu1 %v4965_v18  ;;  %2584 = vmatmul.mubr.f32.vlgmr.msra.gmra.mxu0 %v4940_v45  ;;  %v2788_v18 = vand.u32 4294901760, %v5235_v11  ;;  %v2795_v0 = vand.u32 4294901760, %v5250_v48 }
 0x3e2   : > { %2625 = vmatprep.subr.mxu1 %v4973_v16  ;;  %3582 = vmatprep.subr.mxu0 %v5554_v54  ;;  %v5266_v16 = vand.u32 4294901760, %v1961_v8  ;;  %v2823_v26 = vand.u32 4294901760, %v5307_v37 }
 0x3e3   : > { %2627 = vmatpush1.msra.mxu1 %v4980_v12  ;;  %3583 = vmatpush3.msra.mxu0 %v5203_v57  ;;  %v1955_v12 = vsel %vm463_vm8, %v4945_v60, %v1893_v22  ;;  %v2789_v60 = vsub.f32 %v5235_v11, %v2788_v18 }
 0x3e4   : > { %2629 = vmatprep.subr.mxu1 %v5067_v47  ;;  %3584 = vmatprep.subr.mxu0 %v5554_v54  ;;  %v5279_v47 = vsub.f32 %v1964_v30, %v5254_v32  ;;  %v5294_v17 = vsub.f32 %v1961_v8, %v5266_v16  ;;  %v5296_v28 = vand.u32 4294901760, %v1955_v12  ;;  %v2824_v21 = vsub.f32 %v5307_v37, %v2823_v26 }
 0x3e5   : > { %2631 = vmatpush1.msra.mxu1 %v4998_v35  ;;  %3585 = vmatpush3.msra.mxu0 %v5213_v41  ;;  %v2802_v35 = vand.u32 4294901760, %v5260_v3  ;;  %v2790_v9 = vand.u32 4294901760, %v2789_v60 }
 0x3e6   : > { %2633 = vmatprep.subr.mxu1 %v5006_v2  ;;  %3586 = vmatprep.subr.mxu0 %v5554_v54  ;;  %v1952_v2 = vsel %vm463_vm8, %v5083_v7, %v1885_v59  ;;  %v2809_v7 = vand.u32 4294901760, %v5279_v47  ;;  %v2816_v36 = vand.u32 4294901760, %v5294_v17  ;;  %v5319_v40 = vsub.f32 %v1955_v12, %v5296_v28 }
 0x3e7   : > { %2635 = vmatpush1.msra.mxu1 %v5018_v58  ;;  %3587 = vmatpush3.msra.mxu0 %v5226_v27  ;;  %v2796_v58 = vsub.f32 %v5250_v48, %v2795_v0  ;;  %v5309_v61 = vand.u32 4294901760, %v1952_v2  ;;  %v2825_v56 = vand.u32 4294901760, %v2824_v21 }
 0x3e8   : > { %2637 = vmatprep.subr.mxu1 %v5100_v20  ;;  %3588 = vmatprep.subr.mxu0 %v5554_v54  ;;  %v2783_v20 = vand.u32 4294901760, %v2782_v39  ;;  %v2810_v10 = vsub.f32 %v5279_v47, %v2809_v7  ;;  %v2817_v23 = vsub.f32 %v5294_v17, %v2816_v36  ;;  %v2830_v49 = vand.u32 4294901760, %v5319_v40 }
 0x3e9   : > { %2639 = vmatpush1.msra.mxu1 %v5037_v38  ;;  %2672 = vmatprep.mubr.f32.mxu1 %v5554_v54  ;;  %v2803_v38 = vsub.f32 %v5260_v3, %v2802_v35  ;;  %v2797_v33 = vand.u32 4294901760, %v2796_v58  ;;  %v5329_v31 = vsub.f32 %v1952_v2, %v5309_v61 }
 0x3ea   : > { %3589 = vmatpush3.msra.mxu0 %v5237_v29  ;;  %2674 = vmatmul.mubr.f32.vlgmr.msra.gmra.mxu1 %v4940_v45  ;;  %v2811_v62 = vand.u32 4294901760, %v2810_v10  ;;  %v2831_v63 = vsub.f32 %v5319_v40, %v2830_v49  ;;  %v2818_v24 = vand.u32 4294901760, %v2817_v23 }
 0x3eb   : > { %3590 = vmatprep.subr.mxu0 %v5554_v54  ;;  %3603 = vmatprep.subr.mxu1 %v5554_v54  ;;  %v2804_v5 = vand.u32 4294901760, %v2803_v38  ;;  %v2837_v55 = vand.u32 4294901760, %v5329_v31 }
 0x3ec   : > { %3591 = vmatpush3.msra.mxu0 %v5254_v32  ;;  %3604 = vmatpush3.msra.mxu1 %v2783_v20 }
 0x3ed   : > { %3592 = vmatprep.subr.mxu0 %v5554_v54  ;;  %3605 = vmatprep.subr.mxu1 %v5554_v54  ;;  %v2838_v42 = vsub.f32 %v5329_v31, %v2837_v55 }
 0x3ee   : > { %3593 = vmatpush3.msra.mxu0 %v5266_v16  ;;  %3606 = vmatpush3.msra.mxu1 %v2790_v9 }
 0x3ef   : > { %3594 = vmatprep.subr.mxu0 %v5554_v54  ;;  %3607 = vmatprep.subr.mxu1 %v5554_v54  ;;  %v2839_v51 = vand.u32 4294901760, %v2838_v42 }
 0x3f0   : > { %3595 = vmatpush3.msra.mxu0 %v5281_v15  ;;  %3608 = vmatpush3.msra.mxu1 %v2797_v33 }
 0x3f1   : > { %3596 = vmatprep.subr.mxu0 %v5554_v54  ;;  %3609 = vmatprep.subr.mxu1 %v5554_v54 }
 0x3f2   : > { %3597 = vmatpush3.msra.mxu0 %v5296_v28  ;;  %3610 = vmatpush3.msra.mxu1 %v2804_v5 }
 0x3f3   : > { %3598 = vmatprep.subr.mxu0 %v5554_v54  ;;  %3611 = vmatprep.subr.mxu1 %v5554_v54 }
 0x3f4   : > { %3599 = vmatpush3.msra.mxu0 %v5309_v61  ;;  %3600 = vmatprep.mubr.msk.f32.mxu0 %vm3881_vm10, %v5554_v54 }
 0x3f5   : > { %3612 = vmatpush3.msra.mxu1 %v2811_v62  ;;  %3601 = vmatmul.mubr.f32.vlgmr.msra.gmra.mxu0 %v5103_v52  ;;  %v2832_v52 = vand.u32 4294901760, %v2831_v63 }
 0x3f6   : > { %3613 = vmatprep.subr.mxu1 %v5554_v54  ;;  %3624 = vmatprep.subr.mxu0 %v5554_v54 }
 0x3f7   : > { %3614 = vmatpush3.msra.mxu1 %v2818_v24  ;;  %3625 = vmatpush3.msra.mxu0 %v5224_v50 }
 0x3f8   : > { %3615 = vmatprep.subr.mxu1 %v5554_v54  ;;  %3626 = vmatprep.subr.mxu0 %v5554_v54 }
 0x3f9   : > { %3616 = vmatpush3.msra.mxu1 %v2825_v56  ;;  %3627 = vmatpush3.msra.mxu0 %v5235_v11 }
 0x3fa   : > { %3617 = vmatprep.subr.mxu1 %v5554_v54  ;;  %3628 = vmatprep.subr.mxu0 %v5554_v54 }
 0x3fb   : > { %3618 = vmatpush3.msra.mxu1 %v2832_v52  ;;  %3629 = vmatpush3.msra.mxu0 %v5250_v48  ;;  %v3230_v48 = vld [vmem:[%s4008_s29 + $0x8] sm:$0xff] }
 0x3fc   : > { %3619 = vmatprep.subr.mxu1 %v5554_v54  ;;  %3630 = vmatprep.subr.mxu0 %v5554_v54 }
 0x3fd   : > { %3620 = vmatpush3.msra.mxu1 %v2839_v51  ;;  %3621 = vmatprep.mubr.msk.f32.mxu1 %vm3881_vm10, %v5554_v54 }
 0x3fe   : > { %3631 = vmatpush3.msra.mxu0 %v5260_v3  ;;  %3622 = vmatmul.mubr.f32.vlgmr.msra.gmra.mxu1 %v4940_v45  ;;  %v3231_v3 = vld [vmem:[%s4008_s29 + $0x10] sm:$0xff] }
 0x3ff   : > { %3632 = vmatprep.subr.mxu0 %v5554_v54  ;;  %3645 = vmatprep.subr.mxu1 %v5554_v54 }
 0x400   : > { %3633 = vmatpush3.msra.mxu0 %v5279_v47  ;;  %3646 = vmatpush3.msra.mxu1 %v5203_v57 }
 0x401   : > { %3634 = vmatprep.subr.mxu0 %v5554_v54  ;;  %3647 = vmatprep.subr.mxu1 %v5554_v54 }
 0x402   : > { %3635 = vmatpush3.msra.mxu0 %v5294_v17  ;;  %3648 = vmatpush3.msra.mxu1 %v5213_v41 }
 0x403   : > { %3636 = vmatprep.subr.mxu0 %v5554_v54  ;;  %3649 = vmatprep.subr.mxu1 %v5554_v54 }
 0x404   : > { %3637 = vmatpush3.msra.mxu0 %v5307_v37  ;;  %3650 = vmatpush3.msra.mxu1 %v5226_v27 }
 0x405   : > { %3638 = vmatprep.subr.mxu0 %v5554_v54  ;;  %3651 = vmatprep.subr.mxu1 %v5554_v54 }
 0x406   : > { %3639 = vmatpush3.msra.mxu0 %v5319_v40  ;;  %3652 = vmatpush3.msra.mxu1 %v5237_v29  ;;  %v3232_v40 = vld [vmem:[%s4008_s29 + $0x18] sm:$0xff]  ;;  %s3806_s29 = sshll.u32 %s3882_s15, 4  ;;  %s3807_s29 = int_to_ptr.vmem [resolvable:$false] %s3806_s29 }
 0x407   : > { %3640 = vmatprep.subr.mxu0 %v5554_v54  ;;  %3653 = vmatprep.subr.mxu1 %v5554_v54  ;;  %s3808_s25 = scalar_lea.vmem %s3807_s29, 768  ;;  %p3809_p3 = scmp.lt.s32.totalorder %s3258_s12, %s3807_s29 }
 0x408   : > { %3641 = vmatpush3.msra.mxu0 %v5329_v31  ;;  %3642 = vmatprep.mubr.msk.f32.mxu0 %vm3881_vm10, %v5554_v54  ;;  %p3810_p8 = scmp.lt.s32.totalorder %s3808_s25, %s3802_s28 }
 0x409   : > { %3654 = vmatpush3.msra.mxu1 %v5254_v32  ;;  %3643 = vmatmul.mubr.f32.vlgmr.msra.gmra.mxu0 %v4963_v53 }
 0x40a   : > { %3655 = vmatprep.subr.mxu1 %v5554_v54  ;;  %3666 = vmatprep.subr.mxu0 %v5554_v54  ;;  %p3811_p10 = por %p3810_p8, %p3809_p3 }
 0x40b   : > { %3656 = vmatpush3.msra.mxu1 %v5266_v16  ;;  %3667 = vmatpush3.msra.mxu0 %v2781_v4 }
 0x40c   : > { %3657 = vmatprep.subr.mxu1 %v5554_v54  ;;  %3668 = vmatprep.subr.mxu0 %v5554_v54  ;;  %p3812_p2 = pnand %p3811_p10, %p3805_p1 }
 0x40d   : > { %3658 = vmatpush3.msra.mxu1 %v5281_v15  ;;  %3669 = vmatpush3.msra.mxu0 %v2788_v18 }
 0x40e   : > { %3659 = vmatprep.subr.mxu1 %v5554_v54  ;;  %3670 = vmatprep.subr.mxu0 %v5554_v54 }
 0x40f   : > { %3660 = vmatpush3.msra.mxu1 %v5296_v28  ;;  %3671 = vmatpush3.msra.mxu0 %v2795_v0 }
 0x410   : > { %3661 = vmatprep.subr.mxu1 %v5554_v54  ;;  %3672 = vmatprep.subr.mxu0 %v5554_v54 }
 0x411   : > { %3662 = vmatpush3.msra.mxu1 %v5309_v61  ;;  %3663 = vmatprep.mubr.msk.f32.mxu1 %vm3881_vm10, %v5554_v54 }
 0x412   : > { %3673 = vmatpush3.msra.mxu0 %v2802_v35  ;;  %3664 = vmatmul.mubr.f32.vlgmr.msra.gmra.mxu1 %v4993_v13 }
 0x413   : > { %3674 = vmatprep.subr.mxu0 %v5554_v54  ;;  %3687 = vmatprep.subr.mxu1 %v5554_v54 }
 0x414   : > { %3675 = vmatpush3.msra.mxu0 %v2809_v7  ;;  %3688 = vmatpush3.msra.mxu1 %v5203_v57 }
 0x415   : > { %3676 = vmatprep.subr.mxu0 %v5554_v54  ;;  %3689 = vmatprep.subr.mxu1 %v5554_v54 }
 0x416   : > { %3677 = vmatpush3.msra.mxu0 %v2816_v36  ;;  %3690 = vmatpush3.msra.mxu1 %v5213_v41 }
 0x417   : > { %3678 = vmatprep.subr.mxu0 %v5554_v54  ;;  %3691 = vmatprep.subr.mxu1 %v5554_v54 }
 0x418   : > { %3679 = vmatpush3.msra.mxu0 %v2823_v26  ;;  %3692 = vmatpush3.msra.mxu1 %v5226_v27 }
 0x419   : > { %3680 = vmatprep.subr.mxu0 %v5554_v54  ;;  %3693 = vmatprep.subr.mxu1 %v5554_v54 }
 0x41a   : > { %3681 = vmatpush3.msra.mxu0 %v2830_v49  ;;  %3694 = vmatpush3.msra.mxu1 %v5237_v29 }
 0x41b   : > { %3682 = vmatprep.subr.mxu0 %v5554_v54  ;;  %3695 = vmatprep.subr.mxu1 %v5554_v54 }
 0x41c   : > { %3683 = vmatpush3.msra.mxu0 %v2837_v55  ;;  %3684 = vmatprep.mubr.msk.f32.mxu0 %vm3881_vm10, %v5554_v54 }
 0x41d   : > { %3696 = vmatpush3.msra.mxu1 %v5254_v32  ;;  %3685 = vmatmul.mubr.f32.vlgmr.msra.gmra.mxu0 %v4940_v45 }
 0x41e   : > { %3697 = vmatprep.subr.mxu1 %v5554_v54  ;;  %3705 = vmatprep.mubr.msk.f32.mxu1 %vm3881_vm10, %v5554_v54 }
 0x41f   : > { %3698 = vmatpush3.msra.mxu1 %v5266_v16 }
 0x420   : > { %3699 = vmatprep.subr.mxu1 %v5554_v54 }
 0x421   : > { %3700 = vmatpush3.msra.mxu1 %v5281_v15 }
 0x422   : > { %3701 = vmatprep.subr.mxu1 %v5554_v54 }
 0x423   : > { %3702 = vmatpush3.msra.mxu1 %v5296_v28 }
 0x424   : > { %3703 = vmatprep.subr.mxu1 %v5554_v54 }
 0x425   : > { %3704 = vmatpush3.msra.mxu1 %v5309_v61 }
 0x426   : > { %3706 = vmatmul.mubr.f32.vlgmr.msra.gmra.mxu1 %v4940_v45 }
 0x47a   : > { %v2096_v53 = vpop.f32.mrf.mxu0 }
 0x47b   : > { %v2097_v19 = vadd.f32 %v2096_v53, %v1876_v44 }
 0x47c   : > { %v2098_v13 = vpop.f32.mrf.mxu0 }
 0x47d   : > { %v2099_v25 = vadd.f32 %v2098_v13, %v1876_v44 }
 0x482   : > { %v2258_v57 = vpop.f32.mrf.mxu1 }
 0x483   : > { %v2259_v50 = vadd.f32 %v2258_v57, %v2097_v19 }
 0x484   : > { %v2260_v41 = vpop.f32.mrf.mxu1 }
 0x485   : > { %v2261_v14 = vadd.f32 %v2260_v41, %v2099_v25 }
 0x48d   : > { %v2367_v6 = vpop.f32.mrf.mxu0 }
 0x48e   : > { %v2368_v54 = vadd.f32 %v2367_v6, %v2259_v50 }
 0x48f   : > { %v2369_v43 = vpop.f32.mrf.mxu0 }
 0x490   : > { %v2370_v11 = vadd.f32 %v2369_v43, %v2261_v14 }
 0x496   : > { %v2459_v34 = vpop.f32.mrf.mxu1 }
 0x497   : > { %v2460_v45 = vadd.f32 %v2459_v34, %v2368_v54 }
 0x498   : > { %v2461_v46 = vpop.f32.mrf.mxu1 }
 0x499   : > { %v2462_v30 = vadd.f32 %v2461_v46, %v2370_v11 }
 0x4a1   : > { %v2585_v27 = vpop.f32.mrf.mxu0 }
 0x4a2   : > { %v2586_v8 = vadd.f32 %v2585_v27, %v2460_v45 }
 0x4a3   : > { %v2587_v29 = vpop.f32.mrf.mxu0 }
 0x4a4   : > { %v2588_v22 = vadd.f32 %v2587_v29, %v2462_v30 }
 0x4aa   : > { %v2675_v4 = vpop.f32.mrf.mxu1 }
 0x4ab   : > { %v2676_v32 = vadd.f32 %v2675_v4, %v2586_v8 }
 0x4ac   : > { %v2677_v18 = vpop.f32.mrf.mxu1 }
 0x4ad   : > { %v3233_v1 = vadd.f32 %v3230_v48, %v2676_v32  ;;  %v2678_v16 = vadd.f32 %v2677_v18, %v2588_v22 }
 0x4af   : > { %v3236_v59 = vmax.f32 %v3233_v1, 0.0  ;;  %v3234_v12 = vadd.f32 %v3231_v3, %v2678_v16 }
 0x4b1   : > { %3239 = vst [vmem:[%s4015_s16] sm:$0xff] %v3236_v59  ;;  %v3237_v39 = vmax.f32 %v3234_v12, 0.0 }
 0x4b3   : > { %3240 = vst [vmem:[%s4015_s16 + $0x8] sm:$0xff] %v3237_v39 }
 0x4b5   : > { %v2760_v0 = vpop.f32.mrf.mxu0 }
 0x4b6   : > { %v2761_v58 = vadd.f32 %v2760_v0, %v1876_v44 }
 0x4b7   : > { %v3602_v47 = vpop.f32.mrf.mxu0 }
 0x4be   : > { %v2876_v15 = vpop.f32.mrf.mxu1 }
 0x4bf   : > { %v2877_v7 = vadd.f32 %v2876_v15, %v2761_v58 }
 0x4c0   : > { %v3623_v60 = vpop.f32.mrf.mxu1 }
 0x4c9   : > { %v2966_v35 = vpop.f32.mrf.mxu0 }
 0x4ca   : > { %v2967_v61 = vadd.f32 %v2966_v35, %v2877_v7 }
 0x4cb   : > { %v3644_v2 = vpop.f32.mrf.mxu0 }
 0x4d2   : > { %v3048_v17 = vpop.f32.mrf.mxu1 }
 0x4d3   : > { %v3049_v38 = vadd.f32 %v3048_v17, %v2967_v61 }
 0x4d4   : > { %v3665_v28 = vpop.f32.mrf.mxu1 }
 0x4dd   : > { %v3146_v20 = vpop.f32.mrf.mxu0 }
 0x4de   : > { %v3147_v9 = vadd.f32 %v3146_v20, %v3049_v38 }
 0x4df   : > { %v3686_v37 = vpop.f32.mrf.mxu0 }
 0x4e6   : > { %v3226_v36 = vpop.f32.mrf.mxu1 }
 0x4e7   : > { %v3227_v33 = vadd.f32 %v3226_v36, %v3147_v9 }
 0x4e8   : > { %v3707_v10 = vpop.f32.mrf.mxu1 }
 0x4e9   : > { %v3235_v26 = vadd.f32 %v3232_v40, %v3227_v33 }
 0x4eb   : > { %v3238_v31 = vmax.f32 %v3235_v26, 0.0 }
 0x4ed   : > { %3241 = vst [vmem:[%s4015_s16 + $0x10] sm:$0xff] %v3238_v31 }
 0x4ee   : > { %3815 = shalt.err (!%p3812_p2)
}
 0x4ef   : > { %s3816_s18 = scalar_lea.hbm %s3255_s17, 384  ;;  %s3820_s7 = scalar_lea.hbm %s5505_s6, 768 }
 0x4f0   : > { %p3817_p4 = scmp.ne.s32.totalorder %s3255_s17, %s3816_s18  ;;  %p3821_p5 = scmp.lt.s32.totalorder %s3255_s17, %s5505_s6 }
 0x4f1   : > { %p3822_p6 = scmp.lt.s32.totalorder %s3820_s7, %s3816_s18 }
 0x4f2   : > { %p3818_p9 = pnand %p3817_p4, %p5570_p13 }
 0x4f3   : > { %p3823_p11 = por %p3822_p6, %p3821_p5 }
 0x4f4   : > { %p3819_p7 = pneg %p3818_p9 }
 0x4f6   : > { %p3824_p12 = pnand %p3823_p11, %p3819_p7 }
 0x4f8   : > { %3827 = shalt.err (!%p3824_p12)
}
 0x4f9   : > { %3715 = dma.vmem_to_hbm [thread:$0]  (%p5570_p13), %s3258_s12, 384, %s3255_s17, %s3243_s26  }
 0x4fa PF: > { %s3269_s13 = sand.u32 1, %s3854_s21   ;;  %p5571_p0 = scmp.ne.s32.totalorder %s5537_s9, 0 }
 0x4fb   : > { %p5572_p1 = scmp.ge.s32.totalorder %s3866_s24, 2  ;;  %s3270_s10 = scalar_lea.sflag [#allocation5], %s3269_s13 }
 0x4fd   : > { %p3722_p3 = pnand %p5572_p1, %p5571_p0 }
 0x4ff   : > { %p3723_p8 = pneg %p3722_p3 }
 0x501   : > { %3849 = dma.done.wait (%p3723_p8), %s3270_s10, 384  }
 0x502   : > { %3851 = vsyncadd (%p3723_p8), %s3270_s10, 4294966912  ;;  %p19_p10 = scmp.ge.s32.totalorder %s3943_s27, 4   ;;  %s5573_s21 = smov %s3858_s22 }
 0x503   : > { %s5574_s22 = smov %s3862_s23  ;;  %s5575_s23 = smov %s3955_s30 }
 0x504   : > { %s5576_s24 = smov %s3943_s27  ;;  %21 = sbr.rel (!%p19_p10) target bundleno = 5 (0x5), region = 93 }
 0x509   :  { %3275 = vsyncpa [#allocation4], 1 }
 0x50a   :  { %3277 = vsyncpa [#allocation4 + $0x1], 1 }
 0x50b   :  { %3278 = vsyncpa [#allocation5], 1 }
 0x50c   :  { %3280 = vsyncpa [#allocation5 + $0x1], 1 }

</bundles_post_ra>
